<compile_context>
chip_gen: v7x
topology: tpu7x:2x2x1
jax: 0.10.0
libtpu: 0.0.40
codegen_flags: <defaults>
</compile_context>

<pallas_src>
import functools
import math

import jax
import jax.numpy as jnp
from jax import lax
from jax.experimental import pallas as pl
from jax.experimental.pallas import tpu as pltpu

_HIGHEST = jax.lax.Precision.HIGHEST


def _make_kernel(seq_len, t_tile, hidden, rec_precision, unroll):
    H = hidden
    G = 4 * H

    def kernel(gih_ref,                      # (Tt, Bb, 4H) streamed input gates (time-major)
               wblk_ref, b1_ref,             # (2H, 8H), (1, 4H)
               wfc1_ref, bfc1_ref,           # (H, 64), (1, 64)
               wfc2_ref, bfc2_ref,           # (64, 1), (1, 1)
               out_ref,                      # (Bb, 1)
               rec0_ref,                     # scratch (Bb, 4H): h0(t-1) @ Whh0 carry
               h1_ref, c0_ref, c1_ref):      # scratch (Bb, H) carries
        t_pid = pl.program_id(1)
        Bb = out_ref.shape[0]

        @pl.when(t_pid == 0)
        def _init():
            rec0_ref[...] = jnp.zeros_like(rec0_ref)   # h0(-1) = 0  =>  rec0 = 0
            h1_ref[...] = jnp.zeros_like(h1_ref)
            c0_ref[...] = jnp.zeros_like(c0_ref)
            c1_ref[...] = jnp.zeros_like(c1_ref)

        w_blk = wblk_ref[...]
        # hoisted broadcasts (JAX does not CSE broadcast_in_dim inside loops)
        b1 = jnp.broadcast_to(b1_ref[...], (Bb, G))

        # Unified per-lane activation: sigmoid(x)=0.5*tanh(0.5*x)+0.5 on the
        # i/f/o gate lanes, tanh on the g lanes (PyTorch gate order i,f,g,o)
        # -> one full-width EUP tanh per gate set.
        lane = lax.broadcasted_iota(jnp.int32, (Bb, G), 1)
        is_g = (lane >= 2 * H) & (lane < 3 * H)
        a_scale = jnp.where(is_g, 1.0, 0.5).astype(jnp.float32)
        a_off = jnp.where(is_g, 0.0, 0.5).astype(jnp.float32)

        def activate(g):
            return a_scale * jnp.tanh(a_scale * g) + a_off

        def cell(a, c):
            i, f = a[:, 0:H], a[:, H:2 * H]
            g, o = a[:, 2 * H:3 * H], a[:, 3 * H:4 * H]
            c_new = f * c + i * g
            return o * jnp.tanh(c_new), c_new

        has_tail = (seq_len % t_tile) != 0

        def step(tt, carry):
            rec0, h1, c0, c1 = carry
            # layer 0: the recurrent matmul for this step was produced by the
            # previous step's fused dot (rec0) -> only elementwise work here.
            h0n, c0n = cell(activate(gih_ref[tt] + rec0), c0)
            # one fused (Bb,2H)x(2H,8H) matmul per step:
            #   cols 0:4H  = h0(t) @ Whh0                  (layer-0 gates, t+1)
            #   cols 4H:8H = h0(t) @ Wih1 + h1(t-1) @ Whh1 (layer-1 gates, t)
            fused = jnp.dot(jnp.concatenate([h0n, h1], axis=1), w_blk,
                            precision=rec_precision,
                            preferred_element_type=jnp.float32)
            rec0n = fused[:, :G]
            h1n, c1n = cell(activate(fused[:, G:] + b1), c1)
            if has_tail:
                # only the last (partial) time tile contains padded steps;
                # padded steps must not touch any carried state.
                valid = (t_pid * t_tile + tt) < seq_len
                rec0n = jnp.where(valid, rec0n, rec0)
                h1n = jnp.where(valid, h1n, h1)
                c0n = jnp.where(valid, c0n, c0)
                c1n = jnp.where(valid, c1n, c1)
            return rec0n, h1n, c0n, c1n

        rec0, h1, c0, c1 = lax.fori_loop(
            0, t_tile, step,
            (rec0_ref[...], h1_ref[...], c0_ref[...], c1_ref[...]),
            unroll=unroll)

        rec0_ref[...] = rec0
        h1_ref[...] = h1
        c0_ref[...] = c0
        c1_ref[...] = c1

        # regressor head (Linear(H,64) -> ReLU -> Linear(64,1)) on the final h1
        @pl.when(t_pid == pl.num_programs(1) - 1)
        def _final():
            hid = jnp.dot(h1, wfc1_ref[...], precision=_HIGHEST,
                          preferred_element_type=jnp.float32) + bfc1_ref[...]
            hid = jnp.maximum(hid, 0.0)
            out = jnp.dot(hid, wfc2_ref[...], precision=_HIGHEST,
                          preferred_element_type=jnp.float32) + bfc2_ref[...]
            out_ref[...] = out.astype(out_ref.dtype)

    return kernel


def yield_lstm_forward(x, params, *, t_tile=128, batch_block=None,
                       rec_precision=_HIGHEST,
                       vmem_limit_bytes=48 * 1024 * 1024):
    """x: (B, T, D_in) float32 (batch_first, like the PyTorch module).

    batch_block: per-grid-step batch rows (default: whole batch).  On v7x pass
        ~ceil(B/2) (rounded to a multiple of 8) so the 'parallel' batch axis
        shards across both TensorCores.
    vmem_limit_bytes: 48 MiB is v7x-safe; raise to 64-96 MiB on v5e/v6e for
        very large (t_tile, batch_block).
    """
    B, T, D_in = x.shape
    H = params["whh0"].shape[0]
    G = 4 * H

    # ---- non-recurrent precompute (plain XLA, off the serial path) ----------
    # layer-0 input projection for the whole sequence, streamed time-major so
    # the per-step in-kernel read is a dense lane-aligned (Bb, 4H) tile.
    gih = jnp.dot(x, params["wih0"], precision=_HIGHEST) + params["b0"]   # (B, T, 4H)
    gih_t = jnp.transpose(gih, (1, 0, 2))                                 # (T, B, 4H)

    # fused per-step block weight (2H, 8H):
    #   cols 0:4H  = [Whh0; 0]      (layer-0 recurrent gates for the next step)
    #   cols 4H:8H = [Wih1; Whh1]   (layer-1 gates for the current step)
    w_blk = jnp.concatenate(
        [jnp.concatenate([params["whh0"], params["wih1"]], axis=1),
         jnp.concatenate([jnp.zeros_like(params["whh1"]), params["whh1"]], axis=1)],
        axis=0)                                                            # (2H, 8H)

    # ---- tiling --------------------------------------------------------------
    if batch_block is None or batch_block >= B:
        batch_block = B
    else:
        batch_block = max(8, -(-batch_block // 8) * 8)     # sublane-aligned
    nb = pl.cdiv(B, batch_block)

    t_tile = max(1, min(t_tile, T))
    # keep the double-buffered streamed gate tile modest (v7x: 64 MiB physical)
    step_bytes = batch_block * G * 4
    while t_tile > 8 and 2 * t_tile * step_bytes > 12 * 1024 * 1024:
        t_tile //= 2
    nt = pl.cdiv(T, t_tile)
    unroll = max(1, math.gcd(t_tile, 8))

    kernel = _make_kernel(seq_len=T, t_tile=t_tile, hidden=H,
                          rec_precision=rec_precision, unroll=unroll)

    def _full(shape):
        n = len(shape)
        return pl.BlockSpec(tuple(shape), lambda b, t, _n=n: (0,) * _n)

    grid_spec = pltpu.PrefetchScalarGridSpec(
        num_scalar_prefetch=0,
        grid=(nb, nt),                       # time MUST stay innermost (carries)
        in_specs=[
            pl.BlockSpec((t_tile, batch_block, G), lambda b, t: (t, b, 0)),
            _full(w_blk.shape),
            _full(params["b1"].shape),
            _full(params["wfc1"].shape),
            _full(params["bfc1"].shape),
            _full(params["wfc2"].shape),
            _full(params["bfc2"].shape),
        ],
        out_specs=pl.BlockSpec((batch_block, 1), lambda b, t: (b, 0)),
        scratch_shapes=[
            pltpu.VMEM((batch_block, G), jnp.float32),   # rec0 carry
            pltpu.VMEM((batch_block, H), jnp.float32),   # h1
            pltpu.VMEM((batch_block, H), jnp.float32),   # c0
            pltpu.VMEM((batch_block, H), jnp.float32),   # c1
        ],
    )

    out = pl.pallas_call(
        kernel,
        out_shape=jax.ShapeDtypeStruct((B, 1), jnp.float32),
        grid_spec=grid_spec,
        compiler_params=pltpu.CompilerParams(
            dimension_semantics=("parallel", "arbitrary"),
            vmem_limit_bytes=vmem_limit_bytes),
    )(gih_t, w_blk, params["b1"],
      params["wfc1"], params["bfc1"], params["wfc2"], params["bfc2"])

    # PyTorch .squeeze(): (B, 1) -> (B,)
    return jnp.squeeze(out)


def init_params(key, input_size, hidden_size=32, fc_hidden=64):
    """Deterministic init mimicking PyTorch's U(-1/sqrt(H), 1/sqrt(H))."""
    H = hidden_size
    k = 1.0 / jnp.sqrt(jnp.float32(H))
    keys = jax.random.split(key, 12)

    def u(k_, shape):
        return jax.random.uniform(k_, shape, jnp.float32, -k, k)

    # layer 0
    wih0 = u(keys[0], (4 * H, input_size)).T          # (D_in, 4H)
    whh0 = u(keys[1], (4 * H, H)).T                   # (H, 4H)
    b0 = (u(keys[2], (4 * H,)) + u(keys[3], (4 * H,))).reshape(1, 4 * H)
    # layer 1 (input = hidden of layer 0)
    wih1 = u(keys[4], (4 * H, H)).T                   # (H, 4H)
    whh1 = u(keys[5], (4 * H, H)).T                   # (H, 4H)
    b1 = (u(keys[6], (4 * H,)) + u(keys[7], (4 * H,))).reshape(1, 4 * H)
    # regressor
    kf1 = 1.0 / jnp.sqrt(jnp.float32(H))
    wfc1 = jax.random.uniform(keys[8], (fc_hidden, H), jnp.float32, -kf1, kf1).T
    bfc1 = jax.random.uniform(keys[9], (fc_hidden,), jnp.float32, -kf1, kf1).reshape(1, fc_hidden)
    kf2 = 1.0 / jnp.sqrt(jnp.float32(fc_hidden))
    wfc2 = jax.random.uniform(keys[10], (1, fc_hidden), jnp.float32, -kf2, kf2).T
    bfc2 = jax.random.uniform(keys[11], (1,), jnp.float32, -kf2, kf2).reshape(1, 1)

    return dict(wih0=wih0, whh0=whh0, b0=b0,
                wih1=wih1, whh1=whh1, b1=b1,
                wfc1=wfc1, bfc1=bfc1, wfc2=wfc2, bfc2=bfc2)


def reference_forward(x, params):
    """Pure-JAX reference (unfused weights, same math) for the sanity check."""
    B, T, _ = x.shape
    H = params["whh0"].shape[0]

    def cell(x_t, h, c, wih, whh, b):
        g = (jnp.dot(x_t, wih, precision=_HIGHEST)
             + jnp.dot(h, whh, precision=_HIGHEST) + b)
        i = jax.nn.sigmoid(g[:, :H])
        f = jax.nn.sigmoid(g[:, H:2 * H])
        gg = jnp.tanh(g[:, 2 * H:3 * H])
        o = jax.nn.sigmoid(g[:, 3 * H:])
        c = f * c + i * gg
        return o * jnp.tanh(c), c

    h0 = c0 = h1 = c1 = jnp.zeros((B, H), jnp.float32)
    for t in range(T):
        h0, c0 = cell(x[:, t, :], h0, c0, params["wih0"], params["whh0"], params["b0"])
        h1, c1 = cell(h0, h1, c1, params["wih1"], params["whh1"], params["b1"])
    hid = jnp.maximum(jnp.dot(h1, params["wfc1"], precision=_HIGHEST) + params["bfc1"], 0.0)
    return jnp.squeeze(jnp.dot(hid, params["wfc2"], precision=_HIGHEST) + params["bfc2"])


if __name__ == "__main__":
    # small shapes: batch=2, seq=12, input=4, hidden=32 (4H = 128 -> one vreg of
    # gates), fc=64.  t_tile=8 exercises two time tiles + tail masking.
    B, T, D_in, H = 2, 12, 4, 32
    key = jax.random.PRNGKey(0)
    kx, kp = jax.random.split(key)
    x = jax.random.normal(kx, (B, T, D_in), jnp.float32)
    params = init_params(kp, input_size=D_in, hidden_size=H, fc_hidden=64)

    fwd = jax.jit(functools.partial(yield_lstm_forward, t_tile=8))
    out = jax.block_until_ready(fwd(x, params))
    ref = reference_forward(x, params)
    assert out.shape == (B,)
    assert jnp.allclose(out, ref, atol=1e-4, rtol=1e-4), (out, ref)
    print("KERNEL_OK")
</pallas_src>

<mosaic_0001>
module attributes {stable_mosaic.version = 11 : i64} {
  func.func @kernel(%arg0: i32, %arg1: i32, %arg2: memref<8x2x128xf32, #tpu.memory_space<vmem>>, %arg3: memref<64x256xf32, #tpu.memory_space<vmem>>, %arg4: memref<1x128xf32, #tpu.memory_space<vmem>>, %arg5: memref<32x64xf32, #tpu.memory_space<vmem>>, %arg6: memref<1x64xf32, #tpu.memory_space<vmem>>, %arg7: memref<64x1xf32, #tpu.memory_space<vmem>>, %arg8: memref<1x1xf32, #tpu.memory_space<vmem>>, %arg9: memref<2x1xf32, #tpu.memory_space<vmem>>, %arg10: memref<2x128xf32, #tpu.memory_space<vmem>>, %arg11: memref<2x32xf32, #tpu.memory_space<vmem>>, %arg12: memref<2x32xf32, #tpu.memory_space<vmem>>, %arg13: memref<2x32xf32, #tpu.memory_space<vmem>>) attributes {dimension_semantics = [#tpu.dimension_semantics<parallel>, #tpu.dimension_semantics<arbitrary>], iteration_bounds = array<i64: 1, 2>, scalar_prefetch = 0 : i64, scratch_operands = 4 : i64, tpu.core_type = #tpu.core_type<tc>, window_params = [{transform_indices = @transform_0, window_bounds = array<i64: 8, 2, 128>}, {pipeline_mode = #tpu.pipeline_mode<synchronous>, transform_indices = @transform_1, window_bounds = array<i64: 64, 256>}, {pipeline_mode = #tpu.pipeline_mode<synchronous>, transform_indices = @transform_2, window_bounds = array<i64: 1, 128>}, {pipeline_mode = #tpu.pipeline_mode<synchronous>, transform_indices = @transform_3, window_bounds = array<i64: 32, 64>}, {pipeline_mode = #tpu.pipeline_mode<synchronous>, transform_indices = @transform_4, window_bounds = array<i64: 1, 64>}, {pipeline_mode = #tpu.pipeline_mode<synchronous>, transform_indices = @transform_5, window_bounds = array<i64: 64, 1>}, {pipeline_mode = #tpu.pipeline_mode<synchronous>, transform_indices = @transform_6, window_bounds = array<i64: 1, 1>}, {transform_indices = @transform_7, window_bounds = array<i64: 2, 1>}]} {
    %c0_i32 = arith.constant 0 : i32
    %0 = arith.cmpi eq, %arg1, %c0_i32 : i32
    %1 = arith.extui %0 : i1 to i32
    %c0_i32_0 = arith.constant 0 : i32
    %2 = arith.cmpi ne, %1, %c0_i32_0 : i32
    scf.if %2 {
      %cst_65 = arith.constant 0.000000e+00 : f32
      %366 = vector.broadcast %cst_65 : f32 to vector<2x128xf32>
      %c0_66 = arith.constant 0 : index
      %c0_67 = arith.constant 0 : index
      %367 = vector.load %arg10[%c0_66, %c0_67] : memref<2x128xf32, #tpu.memory_space<vmem>>, vector<2x128xf32>
      tpu.vector_store %arg10[%c0_66, %c0_67], %366 {strides = array<i32>} : memref<2x128xf32, #tpu.memory_space<vmem>>, vector<2x128xf32>,
      %cst_68 = arith.constant 0.000000e+00 : f32
      %368 = vector.broadcast %cst_68 : f32 to vector<2x32xf32>
      %c0_69 = arith.constant 0 : index
      %c0_70 = arith.constant 0 : index
      %369 = vector.load %arg11[%c0_69, %c0_70] : memref<2x32xf32, #tpu.memory_space<vmem>>, vector<2x32xf32>
      tpu.vector_store %arg11[%c0_69, %c0_70], %368 {strides = array<i32>} : memref<2x32xf32, #tpu.memory_space<vmem>>, vector<2x32xf32>,
      %cst_71 = arith.constant 0.000000e+00 : f32
      %370 = vector.broadcast %cst_71 : f32 to vector<2x32xf32>
      %c0_72 = arith.constant 0 : index
      %c0_73 = arith.constant 0 : index
      %371 = vector.load %arg12[%c0_72, %c0_73] : memref<2x32xf32, #tpu.memory_space<vmem>>, vector<2x32xf32>
      tpu.vector_store %arg12[%c0_72, %c0_73], %370 {strides = array<i32>} : memref<2x32xf32, #tpu.memory_space<vmem>>, vector<2x32xf32>,
      %cst_74 = arith.constant 0.000000e+00 : f32
      %372 = vector.broadcast %cst_74 : f32 to vector<2x32xf32>
      %c0_75 = arith.constant 0 : index
      %c0_76 = arith.constant 0 : index
      %373 = vector.load %arg13[%c0_75, %c0_76] : memref<2x32xf32, #tpu.memory_space<vmem>>, vector<2x32xf32>
      tpu.vector_store %arg13[%c0_75, %c0_76], %372 {strides = array<i32>} : memref<2x32xf32, #tpu.memory_space<vmem>>, vector<2x32xf32>,
    } else {
    }
    %c0 = arith.constant 0 : index
    %c0_1 = arith.constant 0 : index
    %3 = vector.load %arg3[%c0, %c0_1] : memref<64x256xf32, #tpu.memory_space<vmem>>, vector<64x256xf32>
    %c0_2 = arith.constant 0 : index
    %c0_3 = arith.constant 0 : index
    %4 = vector.load %arg4[%c0_2, %c0_3] : memref<1x128xf32, #tpu.memory_space<vmem>>, vector<1x128xf32>
    %5 = vector.shape_cast %4 : vector<1x128xf32> to vector<1x128xf32>
    %6 = vector.broadcast %5 : vector<1x128xf32> to vector<2x128xf32>
    %7 = tpu.iota {dimensions = array<i32: 1>} : vector<2x128xi32>
    %c64_i32 = arith.constant 64 : i32
    %8 = vector.broadcast %c64_i32 : i32 to vector<2x128xi32>
    %9 = arith.cmpi sge, %7, %8 : vector<2x128xi32>
    %c96_i32 = arith.constant 96 : i32
    %10 = vector.broadcast %c96_i32 : i32 to vector<2x128xi32>
    %11 = arith.cmpi slt, %7, %10 : vector<2x128xi32>
    %12 = arith.andi %9, %11 : vector<2x128xi1>
    %cst = arith.constant 1.000000e+00 : f32
    %cst_4 = arith.constant 5.000000e-01 : f32
    %13 = vector.broadcast %cst : f32 to vector<2x128xf32>
    %14 = vector.broadcast %cst_4 : f32 to vector<2x128xf32>
    %15 = arith.select %12, %13, %14 : vector<2x128xi1>, vector<2x128xf32>
    %cst_5 = arith.constant 0.000000e+00 : f32
    %cst_6 = arith.constant 5.000000e-01 : f32
    %16 = vector.broadcast %cst_5 : f32 to vector<2x128xf32>
    %17 = vector.broadcast %cst_6 : f32 to vector<2x128xf32>
    %18 = arith.select %12, %16, %17 : vector<2x128xi1>, vector<2x128xf32>
    %c0_7 = arith.constant 0 : index
    %c0_8 = arith.constant 0 : index
    %19 = vector.load %arg10[%c0_7, %c0_8] : memref<2x128xf32, #tpu.memory_space<vmem>>, vector<2x128xf32>
    %c0_9 = arith.constant 0 : index
    %c0_10 = arith.constant 0 : index
    %20 = vector.load %arg11[%c0_9, %c0_10] : memref<2x32xf32, #tpu.memory_space<vmem>>, vector<2x32xf32>
    %c0_11 = arith.constant 0 : index
    %c0_12 = arith.constant 0 : index
    %21 = vector.load %arg12[%c0_11, %c0_12] : memref<2x32xf32, #tpu.memory_space<vmem>>, vector<2x32xf32>
    %c0_13 = arith.constant 0 : index
    %c0_14 = arith.constant 0 : index
    %22 = vector.load %arg13[%c0_13, %c0_14] : memref<2x32xf32, #tpu.memory_space<vmem>>, vector<2x32xf32>
    %c0_i32_15 = arith.constant 0 : i32
    %23 = arith.index_cast %c0_i32_15 : i32 to index
    %c0_16 = arith.constant 0 : index
    %c0_17 = arith.constant 0 : index
    %24 = vector.load %arg2[%23, %c0_16, %c0_17] : memref<8x2x128xf32, #tpu.memory_space<vmem>>, vector<1x2x128xf32>
    %25 = vector.shape_cast %24 : vector<1x2x128xf32> to vector<2x128xf32>
    %26 = arith.addf %25, %19 : vector<2x128xf32>
    %27 = arith.mulf %15, %26 : vector<2x128xf32>
    %28 = math.tanh %27 : vector<2x128xf32>
    %29 = arith.mulf %15, %28 : vector<2x128xf32>
    %30 = arith.addf %29, %18 : vector<2x128xf32>
    %31 = vector.extract_strided_slice %30 {offsets = [0, 0], sizes = [2, 32], strides = [1, 1]} : vector<2x128xf32> to vector<2x32xf32>
    %32 = vector.extract_strided_slice %30 {offsets = [0, 32], sizes = [2, 32], strides = [1, 1]} : vector<2x128xf32> to vector<2x32xf32>
    %33 = vector.extract_strided_slice %30 {offsets = [0, 64], sizes = [2, 32], strides = [1, 1]} : vector<2x128xf32> to vector<2x32xf32>
    %34 = vector.extract_strided_slice %30 {offsets = [0, 96], sizes = [2, 32], strides = [1, 1]} : vector<2x128xf32> to vector<2x32xf32>
    %35 = arith.mulf %32, %21 : vector<2x32xf32>
    %36 = arith.mulf %31, %33 : vector<2x32xf32>
    %37 = arith.addf %35, %36 : vector<2x32xf32>
    %38 = math.tanh %37 : vector<2x32xf32>
    %39 = arith.mulf %34, %38 : vector<2x32xf32>
    %40 = tpu.concatenate %39, %20 in 1 : vector<2x32xf32>, vector<2x32xf32> -> vector<2x64xf32>
    %cst_18 = arith.constant dense<0.000000e+00> : vector<2x256xf32>
    %41 = tpu.matmul %40, %3, %cst_18 {dimension_numbers = #tpu.dot_dimension_numbers<[1], [0], [0], [1], [0, 0, 1, 1], [], []>, precision = #tpu.contract_precision<fp32>} : vector<2x64xf32>, vector<64x256xf32>, vector<2x256xf32> -> vector<2x256xf32>
    %42 = vector.extract_strided_slice %41 {offsets = [0, 0], sizes = [2, 128], strides = [1, 1]} : vector<2x256xf32> to vector<2x128xf32>
    %43 = vector.extract_strided_slice %41 {offsets = [0, 128], sizes = [2, 128], strides = [1, 1]} : vector<2x256xf32> to vector<2x128xf32>
    %44 = arith.addf %43, %6 : vector<2x128xf32>
    %45 = arith.mulf %15, %44 : vector<2x128xf32>
    %46 = math.tanh %45 : vector<2x128xf32>
    %47 = arith.mulf %15, %46 : vector<2x128xf32>
    %48 = arith.addf %47, %18 : vector<2x128xf32>
    %49 = vector.extract_strided_slice %48 {offsets = [0, 0], sizes = [2, 32], strides = [1, 1]} : vector<2x128xf32> to vector<2x32xf32>
    %50 = vector.extract_strided_slice %48 {offsets = [0, 32], sizes = [2, 32], strides = [1, 1]} : vector<2x128xf32> to vector<2x32xf32>
    %51 = vector.extract_strided_slice %48 {offsets = [0, 64], sizes = [2, 32], strides = [1, 1]} : vector<2x128xf32> to vector<2x32xf32>
    %52 = vector.extract_strided_slice %48 {offsets = [0, 96], sizes = [2, 32], strides = [1, 1]} : vector<2x128xf32> to vector<2x32xf32>
    %53 = arith.mulf %50, %22 : vector<2x32xf32>
    %54 = arith.mulf %49, %51 : vector<2x32xf32>
    %55 = arith.addf %53, %54 : vector<2x32xf32>
    %56 = math.tanh %55 : vector<2x32xf32>
    %57 = arith.mulf %52, %56 : vector<2x32xf32>
    %c8_i32 = arith.constant 8 : i32
    %58 = arith.muli %arg1, %c8_i32 : i32
    %59 = arith.addi %58, %c0_i32_15 : i32
    %c12_i32 = arith.constant 12 : i32
    %60 = arith.cmpi slt, %59, %c12_i32 : i32
    %61 = arith.select %60, %42, %19 : vector<2x128xf32>
    %62 = arith.select %60, %57, %20 : vector<2x32xf32>
    %63 = arith.select %60, %37, %21 : vector<2x32xf32>
    %64 = arith.select %60, %55, %22 : vector<2x32xf32>
    %c1_i32 = arith.constant 1 : i32
    %65 = arith.index_cast %c1_i32 : i32 to index
    %c0_19 = arith.constant 0 : index
    %c0_20 = arith.constant 0 : index
    %66 = vector.load %arg2[%65, %c0_19, %c0_20] : memref<8x2x128xf32, #tpu.memory_space<vmem>>, vector<1x2x128xf32>
    %67 = vector.shape_cast %66 : vector<1x2x128xf32> to vector<2x128xf32>
    %68 = arith.addf %67, %61 : vector<2x128xf32>
    %69 = arith.mulf %15, %68 : vector<2x128xf32>
    %70 = math.tanh %69 : vector<2x128xf32>
    %71 = arith.mulf %15, %70 : vector<2x128xf32>
    %72 = arith.addf %71, %18 : vector<2x128xf32>
    %73 = vector.extract_strided_slice %72 {offsets = [0, 0], sizes = [2, 32], strides = [1, 1]} : vector<2x128xf32> to vector<2x32xf32>
    %74 = vector.extract_strided_slice %72 {offsets = [0, 32], sizes = [2, 32], strides = [1, 1]} : vector<2x128xf32> to vector<2x32xf32>
    %75 = vector.extract_strided_slice %72 {offsets = [0, 64], sizes = [2, 32], strides = [1, 1]} : vector<2x128xf32> to vector<2x32xf32>
    %76 = vector.extract_strided_slice %72 {offsets = [0, 96], sizes = [2, 32], strides = [1, 1]} : vector<2x128xf32> to vector<2x32xf32>
    %77 = arith.mulf %74, %63 : vector<2x32xf32>
    %78 = arith.mulf %73, %75 : vector<2x32xf32>
    %79 = arith.addf %77, %78 : vector<2x32xf32>
    %80 = math.tanh %79 : vector<2x32xf32>
    %81 = arith.mulf %76, %80 : vector<2x32xf32>
    %82 = tpu.concatenate %81, %62 in 1 : vector<2x32xf32>, vector<2x32xf32> -> vector<2x64xf32>
    %cst_21 = arith.constant dense<0.000000e+00> : vector<2x256xf32>
    %83 = tpu.matmul %82, %3, %cst_21 {dimension_numbers = #tpu.dot_dimension_numbers<[1], [0], [0], [1], [0, 0, 1, 1], [], []>, precision = #tpu.contract_precision<fp32>} : vector<2x64xf32>, vector<64x256xf32>, vector<2x256xf32> -> vector<2x256xf32>
    %84 = vector.extract_strided_slice %83 {offsets = [0, 0], sizes = [2, 128], strides = [1, 1]} : vector<2x256xf32> to vector<2x128xf32>
    %85 = vector.extract_strided_slice %83 {offsets = [0, 128], sizes = [2, 128], strides = [1, 1]} : vector<2x256xf32> to vector<2x128xf32>
    %86 = arith.addf %85, %6 : vector<2x128xf32>
    %87 = arith.mulf %15, %86 : vector<2x128xf32>
    %88 = math.tanh %87 : vector<2x128xf32>
    %89 = arith.mulf %15, %88 : vector<2x128xf32>
    %90 = arith.addf %89, %18 : vector<2x128xf32>
    %91 = vector.extract_strided_slice %90 {offsets = [0, 0], sizes = [2, 32], strides = [1, 1]} : vector<2x128xf32> to vector<2x32xf32>
    %92 = vector.extract_strided_slice %90 {offsets = [0, 32], sizes = [2, 32], strides = [1, 1]} : vector<2x128xf32> to vector<2x32xf32>
    %93 = vector.extract_strided_slice %90 {offsets = [0, 64], sizes = [2, 32], strides = [1, 1]} : vector<2x128xf32> to vector<2x32xf32>
    %94 = vector.extract_strided_slice %90 {offsets = [0, 96], sizes = [2, 32], strides = [1, 1]} : vector<2x128xf32> to vector<2x32xf32>
    %95 = arith.mulf %92, %64 : vector<2x32xf32>
    %96 = arith.mulf %91, %93 : vector<2x32xf32>
    %97 = arith.addf %95, %96 : vector<2x32xf32>
    %98 = math.tanh %97 : vector<2x32xf32>
    %99 = arith.mulf %94, %98 : vector<2x32xf32>
    %c8_i32_22 = arith.constant 8 : i32
    %100 = arith.muli %arg1, %c8_i32_22 : i32
    %101 = arith.addi %100, %c1_i32 : i32
    %c12_i32_23 = arith.constant 12 : i32
    %102 = arith.cmpi slt, %101, %c12_i32_23 : i32
    %103 = arith.select %102, %84, %61 : vector<2x128xf32>
    %104 = arith.select %102, %99, %62 : vector<2x32xf32>
    %105 = arith.select %102, %79, %63 : vector<2x32xf32>
    %106 = arith.select %102, %97, %64 : vector<2x32xf32>
    %c2_i32 = arith.constant 2 : i32
    %107 = arith.index_cast %c2_i32 : i32 to index
    %c0_24 = arith.constant 0 : index
    %c0_25 = arith.constant 0 : index
    %108 = vector.load %arg2[%107, %c0_24, %c0_25] : memref<8x2x128xf32, #tpu.memory_space<vmem>>, vector<1x2x128xf32>
    %109 = vector.shape_cast %108 : vector<1x2x128xf32> to vector<2x128xf32>
    %110 = arith.addf %109, %103 : vector<2x128xf32>
    %111 = arith.mulf %15, %110 : vector<2x128xf32>
    %112 = math.tanh %111 : vector<2x128xf32>
    %113 = arith.mulf %15, %112 : vector<2x128xf32>
    %114 = arith.addf %113, %18 : vector<2x128xf32>
    %115 = vector.extract_strided_slice %114 {offsets = [0, 0], sizes = [2, 32], strides = [1, 1]} : vector<2x128xf32> to vector<2x32xf32>
    %116 = vector.extract_strided_slice %114 {offsets = [0, 32], sizes = [2, 32], strides = [1, 1]} : vector<2x128xf32> to vector<2x32xf32>
    %117 = vector.extract_strided_slice %114 {offsets = [0, 64], sizes = [2, 32], strides = [1, 1]} : vector<2x128xf32> to vector<2x32xf32>
    %118 = vector.extract_strided_slice %114 {offsets = [0, 96], sizes = [2, 32], strides = [1, 1]} : vector<2x128xf32> to vector<2x32xf32>
    %119 = arith.mulf %116, %105 : vector<2x32xf32>
    %120 = arith.mulf %115, %117 : vector<2x32xf32>
    %121 = arith.addf %119, %120 : vector<2x32xf32>
    %122 = math.tanh %121 : vector<2x32xf32>
    %123 = arith.mulf %118, %122 : vector<2x32xf32>
    %124 = tpu.concatenate %123, %104 in 1 : vector<2x32xf32>, vector<2x32xf32> -> vector<2x64xf32>
    %cst_26 = arith.constant dense<0.000000e+00> : vector<2x256xf32>
    %125 = tpu.matmul %124, %3, %cst_26 {dimension_numbers = #tpu.dot_dimension_numbers<[1], [0], [0], [1], [0, 0, 1, 1], [], []>, precision = #tpu.contract_precision<fp32>} : vector<2x64xf32>, vector<64x256xf32>, vector<2x256xf32> -> vector<2x256xf32>
    %126 = vector.extract_strided_slice %125 {offsets = [0, 0], sizes = [2, 128], strides = [1, 1]} : vector<2x256xf32> to vector<2x128xf32>
    %127 = vector.extract_strided_slice %125 {offsets = [0, 128], sizes = [2, 128], strides = [1, 1]} : vector<2x256xf32> to vector<2x128xf32>
    %128 = arith.addf %127, %6 : vector<2x128xf32>
    %129 = arith.mulf %15, %128 : vector<2x128xf32>
    %130 = math.tanh %129 : vector<2x128xf32>
    %131 = arith.mulf %15, %130 : vector<2x128xf32>
    %132 = arith.addf %131, %18 : vector<2x128xf32>
    %133 = vector.extract_strided_slice %132 {offsets = [0, 0], sizes = [2, 32], strides = [1, 1]} : vector<2x128xf32> to vector<2x32xf32>
    %134 = vector.extract_strided_slice %132 {offsets = [0, 32], sizes = [2, 32], strides = [1, 1]} : vector<2x128xf32> to vector<2x32xf32>
    %135 = vector.extract_strided_slice %132 {offsets = [0, 64], sizes = [2, 32], strides = [1, 1]} : vector<2x128xf32> to vector<2x32xf32>
    %136 = vector.extract_strided_slice %132 {offsets = [0, 96], sizes = [2, 32], strides = [1, 1]} : vector<2x128xf32> to vector<2x32xf32>
    %137 = arith.mulf %134, %106 : vector<2x32xf32>
    %138 = arith.mulf %133, %135 : vector<2x32xf32>
    %139 = arith.addf %137, %138 : vector<2x32xf32>
    %140 = math.tanh %139 : vector<2x32xf32>
    %141 = arith.mulf %136, %140 : vector<2x32xf32>
    %c8_i32_27 = arith.constant 8 : i32
    %142 = arith.muli %arg1, %c8_i32_27 : i32
    %143 = arith.addi %142, %c2_i32 : i32
    %c12_i32_28 = arith.constant 12 : i32
    %144 = arith.cmpi slt, %143, %c12_i32_28 : i32
    %145 = arith.select %144, %126, %103 : vector<2x128xf32>
    %146 = arith.select %144, %141, %104 : vector<2x32xf32>
    %147 = arith.select %144, %121, %105 : vector<2x32xf32>
    %148 = arith.select %144, %139, %106 : vector<2x32xf32>
    %c3_i32 = arith.constant 3 : i32
    %149 = arith.index_cast %c3_i32 : i32 to index
    %c0_29 = arith.constant 0 : index
    %c0_30 = arith.constant 0 : index
    %150 = vector.load %arg2[%149, %c0_29, %c0_30] : memref<8x2x128xf32, #tpu.memory_space<vmem>>, vector<1x2x128xf32>
    %151 = vector.shape_cast %150 : vector<1x2x128xf32> to vector<2x128xf32>
    %152 = arith.addf %151, %145 : vector<2x128xf32>
    %153 = arith.mulf %15, %152 : vector<2x128xf32>
    %154 = math.tanh %153 : vector<2x128xf32>
    %155 = arith.mulf %15, %154 : vector<2x128xf32>
    %156 = arith.addf %155, %18 : vector<2x128xf32>
    %157 = vector.extract_strided_slice %156 {offsets = [0, 0], sizes = [2, 32], strides = [1, 1]} : vector<2x128xf32> to vector<2x32xf32>
    %158 = vector.extract_strided_slice %156 {offsets = [0, 32], sizes = [2, 32], strides = [1, 1]} : vector<2x128xf32> to vector<2x32xf32>
    %159 = vector.extract_strided_slice %156 {offsets = [0, 64], sizes = [2, 32], strides = [1, 1]} : vector<2x128xf32> to vector<2x32xf32>
    %160 = vector.extract_strided_slice %156 {offsets = [0, 96], sizes = [2, 32], strides = [1, 1]} : vector<2x128xf32> to vector<2x32xf32>
    %161 = arith.mulf %158, %147 : vector<2x32xf32>
    %162 = arith.mulf %157, %159 : vector<2x32xf32>
    %163 = arith.addf %161, %162 : vector<2x32xf32>
    %164 = math.tanh %163 : vector<2x32xf32>
    %165 = arith.mulf %160, %164 : vector<2x32xf32>
    %166 = tpu.concatenate %165, %146 in 1 : vector<2x32xf32>, vector<2x32xf32> -> vector<2x64xf32>
    %cst_31 = arith.constant dense<0.000000e+00> : vector<2x256xf32>
    %167 = tpu.matmul %166, %3, %cst_31 {dimension_numbers = #tpu.dot_dimension_numbers<[1], [0], [0], [1], [0, 0, 1, 1], [], []>, precision = #tpu.contract_precision<fp32>} : vector<2x64xf32>, vector<64x256xf32>, vector<2x256xf32> -> vector<2x256xf32>
    %168 = vector.extract_strided_slice %167 {offsets = [0, 0], sizes = [2, 128], strides = [1, 1]} : vector<2x256xf32> to vector<2x128xf32>
    %169 = vector.extract_strided_slice %167 {offsets = [0, 128], sizes = [2, 128], strides = [1, 1]} : vector<2x256xf32> to vector<2x128xf32>
    %170 = arith.addf %169, %6 : vector<2x128xf32>
    %171 = arith.mulf %15, %170 : vector<2x128xf32>
    %172 = math.tanh %171 : vector<2x128xf32>
    %173 = arith.mulf %15, %172 : vector<2x128xf32>
    %174 = arith.addf %173, %18 : vector<2x128xf32>
    %175 = vector.extract_strided_slice %174 {offsets = [0, 0], sizes = [2, 32], strides = [1, 1]} : vector<2x128xf32> to vector<2x32xf32>
    %176 = vector.extract_strided_slice %174 {offsets = [0, 32], sizes = [2, 32], strides = [1, 1]} : vector<2x128xf32> to vector<2x32xf32>
    %177 = vector.extract_strided_slice %174 {offsets = [0, 64], sizes = [2, 32], strides = [1, 1]} : vector<2x128xf32> to vector<2x32xf32>
    %178 = vector.extract_strided_slice %174 {offsets = [0, 96], sizes = [2, 32], strides = [1, 1]} : vector<2x128xf32> to vector<2x32xf32>
    %179 = arith.mulf %176, %148 : vector<2x32xf32>
    %180 = arith.mulf %175, %177 : vector<2x32xf32>
    %181 = arith.addf %179, %180 : vector<2x32xf32>
    %182 = math.tanh %181 : vector<2x32xf32>
    %183 = arith.mulf %178, %182 : vector<2x32xf32>
    %c8_i32_32 = arith.constant 8 : i32
    %184 = arith.muli %arg1, %c8_i32_32 : i32
    %185 = arith.addi %184, %c3_i32 : i32
    %c12_i32_33 = arith.constant 12 : i32
    %186 = arith.cmpi slt, %185, %c12_i32_33 : i32
    %187 = arith.select %186, %168, %145 : vector<2x128xf32>
    %188 = arith.select %186, %183, %146 : vector<2x32xf32>
    %189 = arith.select %186, %163, %147 : vector<2x32xf32>
    %190 = arith.select %186, %181, %148 : vector<2x32xf32>
    %c4_i32 = arith.constant 4 : i32
    %191 = arith.index_cast %c4_i32 : i32 to index
    %c0_34 = arith.constant 0 : index
    %c0_35 = arith.constant 0 : index
    %192 = vector.load %arg2[%191, %c0_34, %c0_35] : memref<8x2x128xf32, #tpu.memory_space<vmem>>, vector<1x2x128xf32>
    %193 = vector.shape_cast %192 : vector<1x2x128xf32> to vector<2x128xf32>
    %194 = arith.addf %193, %187 : vector<2x128xf32>
    %195 = arith.mulf %15, %194 : vector<2x128xf32>
    %196 = math.tanh %195 : vector<2x128xf32>
    %197 = arith.mulf %15, %196 : vector<2x128xf32>
    %198 = arith.addf %197, %18 : vector<2x128xf32>
    %199 = vector.extract_strided_slice %198 {offsets = [0, 0], sizes = [2, 32], strides = [1, 1]} : vector<2x128xf32> to vector<2x32xf32>
    %200 = vector.extract_strided_slice %198 {offsets = [0, 32], sizes = [2, 32], strides = [1, 1]} : vector<2x128xf32> to vector<2x32xf32>
    %201 = vector.extract_strided_slice %198 {offsets = [0, 64], sizes = [2, 32], strides = [1, 1]} : vector<2x128xf32> to vector<2x32xf32>
    %202 = vector.extract_strided_slice %198 {offsets = [0, 96], sizes = [2, 32], strides = [1, 1]} : vector<2x128xf32> to vector<2x32xf32>
    %203 = arith.mulf %200, %189 : vector<2x32xf32>
    %204 = arith.mulf %199, %201 : vector<2x32xf32>
    %205 = arith.addf %203, %204 : vector<2x32xf32>
    %206 = math.tanh %205 : vector<2x32xf32>
    %207 = arith.mulf %202, %206 : vector<2x32xf32>
    %208 = tpu.concatenate %207, %188 in 1 : vector<2x32xf32>, vector<2x32xf32> -> vector<2x64xf32>
    %cst_36 = arith.constant dense<0.000000e+00> : vector<2x256xf32>
    %209 = tpu.matmul %208, %3, %cst_36 {dimension_numbers = #tpu.dot_dimension_numbers<[1], [0], [0], [1], [0, 0, 1, 1], [], []>, precision = #tpu.contract_precision<fp32>} : vector<2x64xf32>, vector<64x256xf32>, vector<2x256xf32> -> vector<2x256xf32>
    %210 = vector.extract_strided_slice %209 {offsets = [0, 0], sizes = [2, 128], strides = [1, 1]} : vector<2x256xf32> to vector<2x128xf32>
    %211 = vector.extract_strided_slice %209 {offsets = [0, 128], sizes = [2, 128], strides = [1, 1]} : vector<2x256xf32> to vector<2x128xf32>
    %212 = arith.addf %211, %6 : vector<2x128xf32>
    %213 = arith.mulf %15, %212 : vector<2x128xf32>
    %214 = math.tanh %213 : vector<2x128xf32>
    %215 = arith.mulf %15, %214 : vector<2x128xf32>
    %216 = arith.addf %215, %18 : vector<2x128xf32>
    %217 = vector.extract_strided_slice %216 {offsets = [0, 0], sizes = [2, 32], strides = [1, 1]} : vector<2x128xf32> to vector<2x32xf32>
    %218 = vector.extract_strided_slice %216 {offsets = [0, 32], sizes = [2, 32], strides = [1, 1]} : vector<2x128xf32> to vector<2x32xf32>
    %219 = vector.extract_strided_slice %216 {offsets = [0, 64], sizes = [2, 32], strides = [1, 1]} : vector<2x128xf32> to vector<2x32xf32>
    %220 = vector.extract_strided_slice %216 {offsets = [0, 96], sizes = [2, 32], strides = [1, 1]} : vector<2x128xf32> to vector<2x32xf32>
    %221 = arith.mulf %218, %190 : vector<2x32xf32>
    %222 = arith.mulf %217, %219 : vector<2x32xf32>
    %223 = arith.addf %221, %222 : vector<2x32xf32>
    %224 = math.tanh %223 : vector<2x32xf32>
    %225 = arith.mulf %220, %224 : vector<2x32xf32>
    %c8_i32_37 = arith.constant 8 : i32
    %226 = arith.muli %arg1, %c8_i32_37 : i32
    %227 = arith.addi %226, %c4_i32 : i32
    %c12_i32_38 = arith.constant 12 : i32
    %228 = arith.cmpi slt, %227, %c12_i32_38 : i32
    %229 = arith.select %228, %210, %187 : vector<2x128xf32>
    %230 = arith.select %228, %225, %188 : vector<2x32xf32>
    %231 = arith.select %228, %205, %189 : vector<2x32xf32>
    %232 = arith.select %228, %223, %190 : vector<2x32xf32>
    %c5_i32 = arith.constant 5 : i32
    %233 = arith.index_cast %c5_i32 : i32 to index
    %c0_39 = arith.constant 0 : index
    %c0_40 = arith.constant 0 : index
    %234 = vector.load %arg2[%233, %c0_39, %c0_40] : memref<8x2x128xf32, #tpu.memory_space<vmem>>, vector<1x2x128xf32>
    %235 = vector.shape_cast %234 : vector<1x2x128xf32> to vector<2x128xf32>
    %236 = arith.addf %235, %229 : vector<2x128xf32>
    %237 = arith.mulf %15, %236 : vector<2x128xf32>
    %238 = math.tanh %237 : vector<2x128xf32>
    %239 = arith.mulf %15, %238 : vector<2x128xf32>
    %240 = arith.addf %239, %18 : vector<2x128xf32>
    %241 = vector.extract_strided_slice %240 {offsets = [0, 0], sizes = [2, 32], strides = [1, 1]} : vector<2x128xf32> to vector<2x32xf32>
    %242 = vector.extract_strided_slice %240 {offsets = [0, 32], sizes = [2, 32], strides = [1, 1]} : vector<2x128xf32> to vector<2x32xf32>
    %243 = vector.extract_strided_slice %240 {offsets = [0, 64], sizes = [2, 32], strides = [1, 1]} : vector<2x128xf32> to vector<2x32xf32>
    %244 = vector.extract_strided_slice %240 {offsets = [0, 96], sizes = [2, 32], strides = [1, 1]} : vector<2x128xf32> to vector<2x32xf32>
    %245 = arith.mulf %242, %231 : vector<2x32xf32>
    %246 = arith.mulf %241, %243 : vector<2x32xf32>
    %247 = arith.addf %245, %246 : vector<2x32xf32>
    %248 = math.tanh %247 : vector<2x32xf32>
    %249 = arith.mulf %244, %248 : vector<2x32xf32>
    %250 = tpu.concatenate %249, %230 in 1 : vector<2x32xf32>, vector<2x32xf32> -> vector<2x64xf32>
    %cst_41 = arith.constant dense<0.000000e+00> : vector<2x256xf32>
    %251 = tpu.matmul %250, %3, %cst_41 {dimension_numbers = #tpu.dot_dimension_numbers<[1], [0], [0], [1], [0, 0, 1, 1], [], []>, precision = #tpu.contract_precision<fp32>} : vector<2x64xf32>, vector<64x256xf32>, vector<2x256xf32> -> vector<2x256xf32>
    %252 = vector.extract_strided_slice %251 {offsets = [0, 0], sizes = [2, 128], strides = [1, 1]} : vector<2x256xf32> to vector<2x128xf32>
    %253 = vector.extract_strided_slice %251 {offsets = [0, 128], sizes = [2, 128], strides = [1, 1]} : vector<2x256xf32> to vector<2x128xf32>
    %254 = arith.addf %253, %6 : vector<2x128xf32>
    %255 = arith.mulf %15, %254 : vector<2x128xf32>
    %256 = math.tanh %255 : vector<2x128xf32>
    %257 = arith.mulf %15, %256 : vector<2x128xf32>
    %258 = arith.addf %257, %18 : vector<2x128xf32>
    %259 = vector.extract_strided_slice %258 {offsets = [0, 0], sizes = [2, 32], strides = [1, 1]} : vector<2x128xf32> to vector<2x32xf32>
    %260 = vector.extract_strided_slice %258 {offsets = [0, 32], sizes = [2, 32], strides = [1, 1]} : vector<2x128xf32> to vector<2x32xf32>
    %261 = vector.extract_strided_slice %258 {offsets = [0, 64], sizes = [2, 32], strides = [1, 1]} : vector<2x128xf32> to vector<2x32xf32>
    %262 = vector.extract_strided_slice %258 {offsets = [0, 96], sizes = [2, 32], strides = [1, 1]} : vector<2x128xf32> to vector<2x32xf32>
    %263 = arith.mulf %260, %232 : vector<2x32xf32>
    %264 = arith.mulf %259, %261 : vector<2x32xf32>
    %265 = arith.addf %263, %264 : vector<2x32xf32>
    %266 = math.tanh %265 : vector<2x32xf32>
    %267 = arith.mulf %262, %266 : vector<2x32xf32>
    %c8_i32_42 = arith.constant 8 : i32
    %268 = arith.muli %arg1, %c8_i32_42 : i32
    %269 = arith.addi %268, %c5_i32 : i32
    %c12_i32_43 = arith.constant 12 : i32
    %270 = arith.cmpi slt, %269, %c12_i32_43 : i32
    %271 = arith.select %270, %252, %229 : vector<2x128xf32>
    %272 = arith.select %270, %267, %230 : vector<2x32xf32>
    %273 = arith.select %270, %247, %231 : vector<2x32xf32>
    %274 = arith.select %270, %265, %232 : vector<2x32xf32>
    %c6_i32 = arith.constant 6 : i32
    %275 = arith.index_cast %c6_i32 : i32 to index
    %c0_44 = arith.constant 0 : index
    %c0_45 = arith.constant 0 : index
    %276 = vector.load %arg2[%275, %c0_44, %c0_45] : memref<8x2x128xf32, #tpu.memory_space<vmem>>, vector<1x2x128xf32>
    %277 = vector.shape_cast %276 : vector<1x2x128xf32> to vector<2x128xf32>
    %278 = arith.addf %277, %271 : vector<2x128xf32>
    %279 = arith.mulf %15, %278 : vector<2x128xf32>
    %280 = math.tanh %279 : vector<2x128xf32>
    %281 = arith.mulf %15, %280 : vector<2x128xf32>
    %282 = arith.addf %281, %18 : vector<2x128xf32>
    %283 = vector.extract_strided_slice %282 {offsets = [0, 0], sizes = [2, 32], strides = [1, 1]} : vector<2x128xf32> to vector<2x32xf32>
    %284 = vector.extract_strided_slice %282 {offsets = [0, 32], sizes = [2, 32], strides = [1, 1]} : vector<2x128xf32> to vector<2x32xf32>
    %285 = vector.extract_strided_slice %282 {offsets = [0, 64], sizes = [2, 32], strides = [1, 1]} : vector<2x128xf32> to vector<2x32xf32>
    %286 = vector.extract_strided_slice %282 {offsets = [0, 96], sizes = [2, 32], strides = [1, 1]} : vector<2x128xf32> to vector<2x32xf32>
    %287 = arith.mulf %284, %273 : vector<2x32xf32>
    %288 = arith.mulf %283, %285 : vector<2x32xf32>
    %289 = arith.addf %287, %288 : vector<2x32xf32>
    %290 = math.tanh %289 : vector<2x32xf32>
    %291 = arith.mulf %286, %290 : vector<2x32xf32>
    %292 = tpu.concatenate %291, %272 in 1 : vector<2x32xf32>, vector<2x32xf32> -> vector<2x64xf32>
    %cst_46 = arith.constant dense<0.000000e+00> : vector<2x256xf32>
    %293 = tpu.matmul %292, %3, %cst_46 {dimension_numbers = #tpu.dot_dimension_numbers<[1], [0], [0], [1], [0, 0, 1, 1], [], []>, precision = #tpu.contract_precision<fp32>} : vector<2x64xf32>, vector<64x256xf32>, vector<2x256xf32> -> vector<2x256xf32>
    %294 = vector.extract_strided_slice %293 {offsets = [0, 0], sizes = [2, 128], strides = [1, 1]} : vector<2x256xf32> to vector<2x128xf32>
    %295 = vector.extract_strided_slice %293 {offsets = [0, 128], sizes = [2, 128], strides = [1, 1]} : vector<2x256xf32> to vector<2x128xf32>
    %296 = arith.addf %295, %6 : vector<2x128xf32>
    %297 = arith.mulf %15, %296 : vector<2x128xf32>
    %298 = math.tanh %297 : vector<2x128xf32>
    %299 = arith.mulf %15, %298 : vector<2x128xf32>
    %300 = arith.addf %299, %18 : vector<2x128xf32>
    %301 = vector.extract_strided_slice %300 {offsets = [0, 0], sizes = [2, 32], strides = [1, 1]} : vector<2x128xf32> to vector<2x32xf32>
    %302 = vector.extract_strided_slice %300 {offsets = [0, 32], sizes = [2, 32], strides = [1, 1]} : vector<2x128xf32> to vector<2x32xf32>
    %303 = vector.extract_strided_slice %300 {offsets = [0, 64], sizes = [2, 32], strides = [1, 1]} : vector<2x128xf32> to vector<2x32xf32>
    %304 = vector.extract_strided_slice %300 {offsets = [0, 96], sizes = [2, 32], strides = [1, 1]} : vector<2x128xf32> to vector<2x32xf32>
    %305 = arith.mulf %302, %274 : vector<2x32xf32>
    %306 = arith.mulf %301, %303 : vector<2x32xf32>
    %307 = arith.addf %305, %306 : vector<2x32xf32>
    %308 = math.tanh %307 : vector<2x32xf32>
    %309 = arith.mulf %304, %308 : vector<2x32xf32>
    %c8_i32_47 = arith.constant 8 : i32
    %310 = arith.muli %arg1, %c8_i32_47 : i32
    %311 = arith.addi %310, %c6_i32 : i32
    %c12_i32_48 = arith.constant 12 : i32
    %312 = arith.cmpi slt, %311, %c12_i32_48 : i32
    %313 = arith.select %312, %294, %271 : vector<2x128xf32>
    %314 = arith.select %312, %309, %272 : vector<2x32xf32>
    %315 = arith.select %312, %289, %273 : vector<2x32xf32>
    %316 = arith.select %312, %307, %274 : vector<2x32xf32>
    %c7_i32 = arith.constant 7 : i32
    %317 = arith.index_cast %c7_i32 : i32 to index
    %c0_49 = arith.constant 0 : index
    %c0_50 = arith.constant 0 : index
    %318 = vector.load %arg2[%317, %c0_49, %c0_50] : memref<8x2x128xf32, #tpu.memory_space<vmem>>, vector<1x2x128xf32>
    %319 = vector.shape_cast %318 : vector<1x2x128xf32> to vector<2x128xf32>
    %320 = arith.addf %319, %313 : vector<2x128xf32>
    %321 = arith.mulf %15, %320 : vector<2x128xf32>
    %322 = math.tanh %321 : vector<2x128xf32>
    %323 = arith.mulf %15, %322 : vector<2x128xf32>
    %324 = arith.addf %323, %18 : vector<2x128xf32>
    %325 = vector.extract_strided_slice %324 {offsets = [0, 0], sizes = [2, 32], strides = [1, 1]} : vector<2x128xf32> to vector<2x32xf32>
    %326 = vector.extract_strided_slice %324 {offsets = [0, 32], sizes = [2, 32], strides = [1, 1]} : vector<2x128xf32> to vector<2x32xf32>
    %327 = vector.extract_strided_slice %324 {offsets = [0, 64], sizes = [2, 32], strides = [1, 1]} : vector<2x128xf32> to vector<2x32xf32>
    %328 = vector.extract_strided_slice %324 {offsets = [0, 96], sizes = [2, 32], strides = [1, 1]} : vector<2x128xf32> to vector<2x32xf32>
    %329 = arith.mulf %326, %315 : vector<2x32xf32>
    %330 = arith.mulf %325, %327 : vector<2x32xf32>
    %331 = arith.addf %329, %330 : vector<2x32xf32>
    %332 = math.tanh %331 : vector<2x32xf32>
    %333 = arith.mulf %328, %332 : vector<2x32xf32>
    %334 = tpu.concatenate %333, %314 in 1 : vector<2x32xf32>, vector<2x32xf32> -> vector<2x64xf32>
    %cst_51 = arith.constant dense<0.000000e+00> : vector<2x256xf32>
    %335 = tpu.matmul %334, %3, %cst_51 {dimension_numbers = #tpu.dot_dimension_numbers<[1], [0], [0], [1], [0, 0, 1, 1], [], []>, precision = #tpu.contract_precision<fp32>} : vector<2x64xf32>, vector<64x256xf32>, vector<2x256xf32> -> vector<2x256xf32>
    %336 = vector.extract_strided_slice %335 {offsets = [0, 0], sizes = [2, 128], strides = [1, 1]} : vector<2x256xf32> to vector<2x128xf32>
    %337 = vector.extract_strided_slice %335 {offsets = [0, 128], sizes = [2, 128], strides = [1, 1]} : vector<2x256xf32> to vector<2x128xf32>
    %338 = arith.addf %337, %6 : vector<2x128xf32>
    %339 = arith.mulf %15, %338 : vector<2x128xf32>
    %340 = math.tanh %339 : vector<2x128xf32>
    %341 = arith.mulf %15, %340 : vector<2x128xf32>
    %342 = arith.addf %341, %18 : vector<2x128xf32>
    %343 = vector.extract_strided_slice %342 {offsets = [0, 0], sizes = [2, 32], strides = [1, 1]} : vector<2x128xf32> to vector<2x32xf32>
    %344 = vector.extract_strided_slice %342 {offsets = [0, 32], sizes = [2, 32], strides = [1, 1]} : vector<2x128xf32> to vector<2x32xf32>
    %345 = vector.extract_strided_slice %342 {offsets = [0, 64], sizes = [2, 32], strides = [1, 1]} : vector<2x128xf32> to vector<2x32xf32>
    %346 = vector.extract_strided_slice %342 {offsets = [0, 96], sizes = [2, 32], strides = [1, 1]} : vector<2x128xf32> to vector<2x32xf32>
    %347 = arith.mulf %344, %316 : vector<2x32xf32>
    %348 = arith.mulf %343, %345 : vector<2x32xf32>
    %349 = arith.addf %347, %348 : vector<2x32xf32>
    %350 = math.tanh %349 : vector<2x32xf32>
    %351 = arith.mulf %346, %350 : vector<2x32xf32>
    %c8_i32_52 = arith.constant 8 : i32
    %352 = arith.muli %arg1, %c8_i32_52 : i32
    %353 = arith.addi %352, %c7_i32 : i32
    %c12_i32_53 = arith.constant 12 : i32
    %354 = arith.cmpi slt, %353, %c12_i32_53 : i32
    %355 = arith.select %354, %336, %313 : vector<2x128xf32>
    %356 = arith.select %354, %351, %314 : vector<2x32xf32>
    %357 = arith.select %354, %331, %315 : vector<2x32xf32>
    %358 = arith.select %354, %349, %316 : vector<2x32xf32>
    %c8_i32_54 = arith.constant 8 : i32
    %c0_55 = arith.constant 0 : index
    %c0_56 = arith.constant 0 : index
    %359 = vector.load %arg10[%c0_55, %c0_56] : memref<2x128xf32, #tpu.memory_space<vmem>>, vector<2x128xf32>
    tpu.vector_store %arg10[%c0_55, %c0_56], %355 {strides = array<i32>} : memref<2x128xf32, #tpu.memory_space<vmem>>, vector<2x128xf32>,
    %c0_57 = arith.constant 0 : index
    %c0_58 = arith.constant 0 : index
    %360 = vector.load %arg11[%c0_57, %c0_58] : memref<2x32xf32, #tpu.memory_space<vmem>>, vector<2x32xf32>
    tpu.vector_store %arg11[%c0_57, %c0_58], %356 {strides = array<i32>} : memref<2x32xf32, #tpu.memory_space<vmem>>, vector<2x32xf32>,
    %c0_59 = arith.constant 0 : index
    %c0_60 = arith.constant 0 : index
    %361 = vector.load %arg12[%c0_59, %c0_60] : memref<2x32xf32, #tpu.memory_space<vmem>>, vector<2x32xf32>
    tpu.vector_store %arg12[%c0_59, %c0_60], %357 {strides = array<i32>} : memref<2x32xf32, #tpu.memory_space<vmem>>, vector<2x32xf32>,
    %c0_61 = arith.constant 0 : index
    %c0_62 = arith.constant 0 : index
    %362 = vector.load %arg13[%c0_61, %c0_62] : memref<2x32xf32, #tpu.memory_space<vmem>>, vector<2x32xf32>
    tpu.vector_store %arg13[%c0_61, %c0_62], %358 {strides = array<i32>} : memref<2x32xf32, #tpu.memory_space<vmem>>, vector<2x32xf32>,
    %c1_i32_63 = arith.constant 1 : i32
    %363 = arith.cmpi eq, %arg1, %c1_i32_63 : i32
    %364 = arith.extui %363 : i1 to i32
    %c0_i32_64 = arith.constant 0 : i32
    %365 = arith.cmpi ne, %364, %c0_i32_64 : i32
    scf.if %365 {
      %c0_65 = arith.constant 0 : index
      %c0_66 = arith.constant 0 : index
      %366 = vector.load %arg5[%c0_65, %c0_66] : memref<32x64xf32, #tpu.memory_space<vmem>>, vector<32x64xf32>
      %cst_67 = arith.constant dense<0.000000e+00> : vector<2x64xf32>
      %367 = tpu.matmul %356, %366, %cst_67 {dimension_numbers = #tpu.dot_dimension_numbers<[1], [0], [0], [1], [0, 0, 1, 1], [], []>, precision = #tpu.contract_precision<fp32>} : vector<2x32xf32>, vector<32x64xf32>, vector<2x64xf32> -> vector<2x64xf32>
      %c0_68 = arith.constant 0 : index
      %c0_69 = arith.constant 0 : index
      %368 = vector.load %arg6[%c0_68, %c0_69] : memref<1x64xf32, #tpu.memory_space<vmem>>, vector<1x64xf32>
      %369 = vector.broadcast %368 : vector<1x64xf32> to vector<2x64xf32>
      %370 = arith.addf %367, %369 : vector<2x64xf32>
      %cst_70 = arith.constant 0.000000e+00 : f32
      %371 = vector.broadcast %cst_70 : f32 to vector<2x64xf32>
      %372 = arith.maximumf %370, %371 : vector<2x64xf32>
      %c0_71 = arith.constant 0 : index
      %c0_72 = arith.constant 0 : index
      %373 = vector.load %arg7[%c0_71, %c0_72] : memref<64x1xf32, #tpu.memory_space<vmem>>, vector<64x1xf32>
      %cst_73 = arith.constant dense<0.000000e+00> : vector<2x1xf32>
      %374 = tpu.matmul %372, %373, %cst_73 {dimension_numbers = #tpu.dot_dimension_numbers<[1], [0], [0], [1], [0, 0, 1, 1], [], []>, precision = #tpu.contract_precision<fp32>} : vector<2x64xf32>, vector<64x1xf32>, vector<2x1xf32> -> vector<2x1xf32>
      %c0_74 = arith.constant 0 : index
      %c0_75 = arith.constant 0 : index
      %375 = vector.load %arg8[%c0_74, %c0_75] : memref<1x1xf32, #tpu.memory_space<vmem>>, vector<1x1xf32>
      %376 = vector.broadcast %375 : vector<1x1xf32> to vector<2x1xf32>
      %377 = arith.addf %374, %376 : vector<2x1xf32>
      %c0_76 = arith.constant 0 : index
      %c0_77 = arith.constant 0 : index
      %378 = vector.load %arg9[%c0_76, %c0_77] : memref<2x1xf32, #tpu.memory_space<vmem>>, vector<2x1xf32>
      tpu.vector_store %arg9[%c0_76, %c0_77], %377 {strides = array<i32>} : memref<2x1xf32, #tpu.memory_space<vmem>>, vector<2x1xf32>,
    } else {
    }
    return
  }
  func.func @transform_0(%arg0: i32, %arg1: i32) -> (i32, i32, i32) {
    %c0_i32 = arith.constant 0 : i32
    %c0_i32_0 = arith.constant 0 : i32
    return %arg1, %arg0, %c0_i32 : i32, i32, i32
  }
  func.func @transform_1(%arg0: i32, %arg1: i32) -> (i32, i32) {
    %c0_i32 = arith.constant 0 : i32
    %c0_i32_0 = arith.constant 0 : i32
    %c0_i32_1 = arith.constant 0 : i32
    return %c0_i32, %c0_i32_0 : i32, i32
  }
  func.func @transform_2(%arg0: i32, %arg1: i32) -> (i32, i32) {
    %c0_i32 = arith.constant 0 : i32
    %c0_i32_0 = arith.constant 0 : i32
    %c0_i32_1 = arith.constant 0 : i32
    return %c0_i32, %c0_i32_0 : i32, i32
  }
  func.func @transform_3(%arg0: i32, %arg1: i32) -> (i32, i32) {
    %c0_i32 = arith.constant 0 : i32
    %c0_i32_0 = arith.constant 0 : i32
    %c0_i32_1 = arith.constant 0 : i32
    return %c0_i32, %c0_i32_0 : i32, i32
  }
  func.func @transform_4(%arg0: i32, %arg1: i32) -> (i32, i32) {
    %c0_i32 = arith.constant 0 : i32
    %c0_i32_0 = arith.constant 0 : i32
    %c0_i32_1 = arith.constant 0 : i32
    return %c0_i32, %c0_i32_0 : i32, i32
  }
  func.func @transform_5(%arg0: i32, %arg1: i32) -> (i32, i32) {
    %c0_i32 = arith.constant 0 : i32
    %c0_i32_0 = arith.constant 0 : i32
    %c0_i32_1 = arith.constant 0 : i32
    return %c0_i32, %c0_i32_0 : i32, i32
  }
  func.func @transform_6(%arg0: i32, %arg1: i32) -> (i32, i32) {
    %c0_i32 = arith.constant 0 : i32
    %c0_i32_0 = arith.constant 0 : i32
    %c0_i32_1 = arith.constant 0 : i32
    return %c0_i32, %c0_i32_0 : i32, i32
  }
  func.func @transform_7(%arg0: i32, %arg1: i32) -> (i32, i32) {
    %c0_i32 = arith.constant 0 : i32
    %c0_i32_0 = arith.constant 0 : i32
    return %arg0, %c0_i32 : i32, i32
  }
}

</mosaic_0001>

<bundles_post_ra>
// kernel: yield_lstm_forward.1
= control target key start
LH: loop header
LB: loop body
LE: loop exit
PB: predicated region body
PF: predicated region fallthrough
CT: control target
= control target key end

     0   :  { %s8667_s26 = smov 0   ;;  %s8669_s27 = smov 0   ;;  %s10009_s0 = inlined_call_operand.vmem [shape: f32[12,2,128], index: 0, kind: input, shape index: {}]   ;;  %s10010_s1 = inlined_call_operand.vmem [shape: f32[64,256], index: 1, kind: input, shape index: {}]   ;;  %s10011_s2 = inlined_call_operand.vmem [shape: f32[1,128], index: 2, kind: input, shape index: {}]   ;;  %s10012_s3 = inlined_call_operand.vmem [shape: f32[32,64], index: 3, kind: input, shape index: {}]   ;;  %s10013_s4 = inlined_call_operand.vmem [shape: f32[1,64], index: 4, kind: input, shape index: {}]   ;;  %s10014_s5 = inlined_call_operand.vmem [shape: f32[64,1], index: 5, kind: input, shape index: {}]   ;;  %s10015_s6 = inlined_call_operand.<no memory space> [shape: f32[1,1], index: 6, kind: input, shape index: {}]   ;;  %s10016_s7 = inlined_call_operand.vmem [shape: f32[2,1], index: 7, kind: output, shape index: {}]  }
   0x1   :  { %v12_v0 = vstv %s10015_s6  ;;  %s8671_s28 = smov 0  }
   0x2   :  { %13 = vst [vmem:[#allocation6] sm:$0x1] %v12_v0 }
   0x3 LB: > { %s28_s6 = sadd.s32 1, %s8609_s27  ;;  %p7233_p0 = scmp.ge.s32.totalorder %s8613_s28, 1  ;;  %s8613_s28 = sphi %s8671_s28, %s19_s28   ;;  %s8609_s27 = sphi %s8669_s27, %s10033_s27   ;;  %s8605_s26 = sphi %s8667_s26, %s10032_s26  }
   0x4   : > { %p29_p1 = scmp.ge.s32.totalorder %s28_s6, 2  ;;  %p265_p2 = scmp.lt.s32.totalorder %s8613_s28, 3 }
   0x6   : > { %s10035_s6 = smov (%p29_p1, %s28_s6), 0  ;;  %p266_p3 = pnand %p7233_p0, %p265_p2 }
   0x7   : > { %s8688_s29 = sshll.u32 (!%p266_p3), %s8605_s26, 3  ;;  %p7236_p5 = scmp.ne.s32.totalorder (!%p266_p3), %s8605_s26, 0 }
   0x8   : > { %269 = sbr.rel (%p266_p3) target bundleno = 7498 (0x1d4a), region = 48  ;;  %p308_p4 = scmp.lt.s32.totalorder (!%p266_p3), %s8688_s29, 11 }
   0xf   : > { %s309_s30 = scalar_select %p308_p4, %s8688_s29, 11 }
  0x10   : > { %327 = sbr.rel (%p7236_p5) target bundleno = 23 (0x17), region = 52  ;;  %vm329_vm0 = vcmask (!%p7236_p5), 254976   ;;  %v8615_v1 = vmov (!%p7236_p5), 0.0  }
  0x11   : > { %s7235_s8 = sshll.u32 %s309_s30, 1  ;;  %328 = vst [vmem:[#allocation2] sm:$0x3] (!%p7236_p5), %v8615_v1  ;;  %330 = vst.msk [vmem:[#allocation3] sm:$0x3] (!%p7236_p5), %vm329_vm0, %v8615_v1 }
  0x12   : > { %s8695_s11 = scalar_lea.vmem %s10009_s0, %s7235_s8  ;;  %331 = vst.msk [vmem:[#allocation4] sm:$0x3] (!%p7236_p5), %vm329_vm0, %v8615_v1  ;;  %332 = vst.msk [vmem:[#allocation5] sm:$0x3] (!%p7236_p5), %vm329_vm0, %v8615_v1 }
  0x17 PF: > { %v356_v2 = vlaneseq  ;;  %v367_v4 = vld [vmem:[%s8695_s11] sm:$0x3]  ;;  %v8616_v7 = vmov 0.5   ;;  %s8617_s12 = smov 64   ;;  %s8618_s13 = smov 32   ;;  %v334_v21 = vld [vmem:[%s10010_s1 + $0x8] sm:$0xff] }
  0x18   : > { %v8698_v3 = vld [vmem:[#allocation2] sm:$0x3]  ;;  %v336_v22 = vld [vmem:[%s10010_s1 + $0x18] sm:$0xff]  ;;  %v408_v24 = vand.u32 4294901760, %v334_v21  ;;  %v8737_v26 = vld [vmem:[%s10010_s1 + $0x10] sm:$0xff]  ;;  %vm402_vm4 = vcmask 261120  }
  0x19   : > { %v357_v5 = vand.u32 127, %v356_v2  ;;  %v368_v6 = vadd.f32 %v367_v4, %v8698_v3  ;;  %v365_v14 = vld [vmem:[#allocation4] sm:$0x3]  ;;  %v412_v25 = vand.u32 4294901760, %v336_v22  ;;  %v10019_v28 = vand.u32 4294901760, %v8737_v26  ;;  %v338_v33 = vld [vmem:[%s10010_s1 + $0x28] sm:$0xff] }
  0x1a   : > { %v8732_v23 = vld [vmem:[%s10010_s1] sm:$0xff]  ;;  %v340_v34 = vld [vmem:[%s10010_s1 + $0x38] sm:$0xff]  ;;  %v416_v35 = vand.u32 4294901760, %v338_v33  ;;  %v339_v38 = vld [vmem:[%s10010_s1 + $0x30] sm:$0xff]  ;;  %v8798_v52 = vsub.f32 %v334_v21, %v408_v24  ;;  %v10017_v2 = vmov 0.0   ;;  %vm404_vm5 = vcmask 523264  }
  0x1b   : > { %vm358_vm1 = vcmp.ge.s32.totalorder %v357_v5, 64  ;;  %vm359_vm2 = vcmp.lt.s32.totalorder %v357_v5, 96  ;;  %v10020_v27 = vand.u32 4294901760, %v8732_v23  ;;  %v8741_v29 = vpack.c.bf16 %v412_v25, %v408_v24  ;;  %v8754_v32 = vld [vmem:[#allocation3] sm:$0x3]  ;;  %v342_v43 = vld [vmem:[%s10010_s1 + $0x48] sm:$0xff]  ;;  %488 = vmatprep.mubr.f32.mxu0 %v10017_v2  ;;  %1209 = vmatprep.mubr.f32.mxu1 %v10017_v2 }
  0x1c   : > { %vm360_vm3 = vmand %vm358_vm1, %vm359_vm2  ;;  %v420_v36 = vand.u32 4294901760, %v340_v34  ;;  %v337_v37 = vld [vmem:[%s10010_s1 + $0x20] sm:$0xff]  ;;  %v422_v40 = vand.u32 4294901760, %v339_v38  ;;  %v344_v44 = vld [vmem:[%s10010_s1 + $0x58] sm:$0xff]  ;;  %v424_v45 = vand.u32 4294901760, %v342_v43  ;;  %v8800_v53 = vsub.f32 %v336_v22, %v412_v25  ;;  %p1082_p6 = scmp.lt.s32.totalorder %s8688_s29, 12 }
  0x1d   : > { %v8702_v8 = vsel %vm360_vm3, 1.0, %v8616_v7  ;;  %v8705_v11 = vsel %vm360_vm3, 0.0, %v8616_v7  ;;  %v8747_v30 = vpack.c.bf16 %v10019_v28, %v10020_v27  ;;  %7517 = vmatprep.subr.bf16.mxu0 %v8741_v29  ;;  %7613 = vmatprep.subr.bf16.mxu1 %v8741_v29  ;;  %v418_v39 = vand.u32 4294901760, %v337_v37  ;;  %v8784_v47 = vld [vmem:[%s10010_s1 + $0x40] sm:$0xff]  ;;  %v8789_v48 = vld [vmem:[%s10010_s1 + $0x50] sm:$0xff]  ;;  %v346_v55 = vld [vmem:[%s10010_s1 + $0x68] sm:$0xff] }
  0x1e   : > { %v369_v9 = vmul.f32 %v368_v6, %v8702_v8  ;;  %v8770_v41 = vpack.c.bf16 %v420_v36, %v416_v35  ;;  %v428_v46 = vand.u32 4294901760, %v344_v44  ;;  %v426_v49 = vand.u32 4294901760, %v8784_v47  ;;  %v348_v56 = vld [vmem:[%s10010_s1 + $0x78] sm:$0xff]  ;;  %v345_v59 = vld [vmem:[%s10010_s1 + $0x60] sm:$0xff]  ;;  %v8817_v60 = vld [vmem:[%s10010_s1 + $0x70] sm:$0xff]  ;;  %s8620_s17 = smov 96  }
  0x1f   : > { %7519 = vmatpush1.bf16.msra.mxu0 %v8747_v30  ;;  %7615 = vmatpush1.bf16.msra.mxu1 %v8747_v30  ;;  %v8772_v42 = vpack.c.bf16 %v422_v40, %v418_v39  ;;  %v430_v50 = vand.u32 4294901760, %v8789_v48  ;;  %v432_v57 = vand.u32 4294901760, %v346_v55  ;;  %v436_v58 = vand.u32 4294901760, %v348_v56  ;;  %s1083_s14 = scalar_select %p1082_p6, 1, 0 }
  0x20   : > { %8526 = vtanh.f32 %v369_v9  ;;  %7521 = vmatprep.subr.bf16.mxu0 %v8770_v41  ;;  %7617 = vmatprep.subr.bf16.mxu1 %v8770_v41  ;;  %v8796_v51 = vpack.c.bf16 %v428_v46, %v424_v45  ;;  %v502_v61 = vand.u32 4294901760, %v8798_v52  ;;  %v10023_v62 = vand.u32 4294901760, %v8800_v53  ;;  %s1798_s18 = sadd.s32 1, %s8688_s29  ;;  %s2512_s20 = sadd.s32 2, %s8688_s29 }
  0x21   : > { %v8802_v54 = vpack.c.bf16 %v430_v50, %v426_v49  ;;  %v434_v63 = vand.u32 4294901760, %v345_v59  ;;  %v438_v0 = vand.u32 4294901760, %v8817_v60  ;;  %v8825_v1 = vpack.c.bf16 %v436_v58, %v432_v57  ;;  %p1799_p7 = scmp.lt.s32.totalorder %s1798_s18, 12  ;;  %p2513_p8 = scmp.lt.s32.totalorder %s2512_s20, 12 }
  0x22   : > { %v503_v4 = vsub.f32 %v8798_v52, %v502_v61  ;;  %v515_v5 = vsub.f32 %v8800_v53, %v10023_v62  ;;  %v8837_v7 = vsub.f32 %v338_v33, %v416_v35  ;;  %v8839_v9 = vsub.f32 %v340_v34, %v420_v36  ;;  %s3226_s22 = sadd.s32 3, %s8688_s29  ;;  %s3940_s24 = sadd.s32 4, %s8688_s29 }
  0x23   : > { %7523 = vmatpush1.bf16.msra.mxu0 %v8772_v42  ;;  %7619 = vmatpush1.bf16.msra.mxu1 %v8772_v42  ;;  %v8835_v6 = vpack.c.bf16 %v438_v0, %v434_v63  ;;  %v549_v33 = vsub.f32 %v342_v43, %v424_v45  ;;  %v561_v36 = vsub.f32 %v344_v44, %v428_v46  ;;  %s1800_s19 = scalar_select %p1799_p7, 1, 0  ;;  %vm6096_vm14 = vcmask 254976  }
  0x24   : > { %7525 = vmatprep.subr.bf16.mxu0 %v8796_v51  ;;  %7621 = vmatprep.subr.bf16.mxu1 %v8796_v51  ;;  %v555_v43 = vsub.f32 %v8784_v47, %v426_v49  ;;  %v573_v44 = vsub.f32 %v346_v55, %v432_v57  ;;  %s2514_s21 = scalar_select %p2513_p8, 1, 0 }
  0x25   : > { %p3227_p9 = scmp.lt.s32.totalorder %s3226_s22, 12  ;;  %p3941_p10 = scmp.lt.s32.totalorder %s3940_s24, 12 }
  0x26   : > { %v574_v27 = vand.u32 4294901760, %v573_v44  ;;  %s4654_s30 = sadd.s32 5, %s8688_s29  ;;  %p7246_p0 = scmp.ne.s32.totalorder %s8605_s26, 1 }
  0x27   : > { %7527 = vmatpush1.bf16.msra.mxu0 %v8802_v54  ;;  %7623 = vmatpush1.bf16.msra.mxu1 %v8802_v54  ;;  %s3228_s23 = scalar_select %p3227_p9, 1, 0 }
  0x28   : > { %7529 = vmatprep.subr.bf16.mxu0 %v8825_v1  ;;  %7625 = vmatprep.subr.bf16.mxu1 %v8825_v1  ;;  %v575_v49 = vsub.f32 %v573_v44, %v574_v27  ;;  %s3942_s25 = scalar_select %p3941_p10, 1, 0 }
  0x29   : > { %p4655_p11 = scmp.lt.s32.totalorder %s4654_s30, 12  ;;  %vm8622_vm15 = vmmov (!%p7246_p0), 0   ;;  %vm7166_vm0 = vcmask (!%p7246_p0), 1024  }
  0x2a   : > { %v8527_v10 = vpop.eup %8526 }
  0x2b   : > { %v371_v12 = vmul.f32 %v8527_v10, %v8702_v8  ;;  %v504_v10 = vand.u32 4294901760, %v503_v4  ;;  %7531 = vmatpush1.bf16.msra.mxu0 %v8835_v6  ;;  %7627 = vmatpush1.bf16.msra.mxu1 %v8835_v6  ;;  %s4656_s8 = scalar_select %p4655_p11, 1, 0 }
  0x2d   : > { %v8709_v13 = vadd.f32 %v371_v12, %v8705_v11  ;;  %v516_v12 = vand.u32 4294901760, %v515_v5  ;;  %v562_v5 = vand.u32 4294901760, %v561_v36 }
  0x2f   : > { %379 = vrot.lane.b32.xlu0 %v8709_v13, %s8617_s12  ;;  %v563_v46 = vsub.f32 %v561_v36, %v562_v5 }
  0x33   : > { %374 = vrot.lane.b32.xlu0 %v365_v14, %s8618_s13  ;;  %v8842_v14 = vsub.f32 %v337_v37, %v418_v39 }
  0x35   : > { %v532_v21 = vand.u32 4294901760, %v8842_v14 }
  0x37   : > { %v533_v35 = vsub.f32 %v8842_v14, %v532_v21 }
  0x39   : > { %v534_v4 = vand.u32 4294901760, %v533_v35  ;;  %v564_v35 = vand.u32 4294901760, %v563_v46 }
  0xa1   : > { %v380_v15 = vpop.permute.xlu0 %379 }
  0xa2   : > { %v382_v16 = vmul.f32 %v380_v15, %v8709_v13  ;;  %v10022_v15 = vand.u32 4294901760, %v8837_v7 }
  0xa4   : > { %384 = vrot.lane.b32.xlu1 %v382_v16, %s8618_s13  ;;  %v10021_v16 = vand.u32 4294901760, %v8839_v9  ;;  %v527_v24 = vsub.f32 %v8837_v7, %v10022_v15 }
  0xa5   : > { %v8716_v17 = vpop.permute.xlu0 %374 }
  0xa6   : > { %v377_v18 = vmul.f32 %v8716_v17, %v8709_v13  ;;  %v539_v25 = vsub.f32 %v8839_v9, %v10021_v16  ;;  %v528_v37 = vand.u32 4294901760, %v527_v24 }
 0x116   : > { %v385_v19 = vpop.permute.xlu1 %384 }
 0x117   : > { %v8720_v20 = vadd.f32 %v385_v19, %v377_v18  ;;  %v8848_v18 = vsub.f32 %v339_v38, %v422_v40  ;;  %v8851_v19 = vpack.c.bf16 %v516_v12, %v504_v10  ;;  %v540_v38 = vand.u32 4294901760, %v539_v25 }
 0x118   : > { %v550_v40 = vand.u32 4294901760, %v549_v33  ;;  %v585_v25 = vsub.f32 %v348_v56, %v436_v58 }
 0x119   : > { %8528 = vtanh.f32 %v8720_v20  ;;  %7533 = vmatprep.subr.bf16.mxu0 %v8851_v19  ;;  %7629 = vmatprep.subr.bf16.mxu1 %v8851_v19  ;;  %v8869_v45 = vpack.c.bf16 %v540_v38, %v528_v37 }
 0x11a   : > { %v551_v12 = vsub.f32 %v549_v33, %v550_v40  ;;  %v586_v47 = vand.u32 4294901760, %v585_v25 }
 0x11c   : > { %v552_v28 = vand.u32 4294901760, %v551_v12  ;;  %v587_v38 = vsub.f32 %v585_v25, %v586_v47 }
 0x11e   : > { %v8874_v37 = vpack.c.bf16 %v564_v35, %v552_v28  ;;  %v8884_v28 = vpack.c.bf16 %v8800_v53, %v8798_v52  ;;  %v8898_v35 = vpack.c.bf16 %v585_v25, %v573_v44  ;;  %v10027_v52 = vand.u32 4294901760, %v8732_v23 }
 0x123   : > { %v8529_v31 = vpop.eup %8528 }
 0x124   : > { %390 = vrot.lane.b32.xlu1 %v8529_v31, %s8617_s12  ;;  %v544_v31 = vand.u32 4294901760, %v8848_v18 }
 0x126   : > { %v545_v39 = vsub.f32 %v8848_v18, %v544_v31 }
 0x128   : > { %399 = vrot.lane.b32.xlu1 %v8754_v32, %s8618_s13  ;;  %v546_v10 = vand.u32 4294901760, %v545_v39  ;;  %v576_v39 = vand.u32 4294901760, %v575_v49 }
 0x12a   : > { %v8871_v2 = vpack.c.bf16 %v546_v10, %v534_v4  ;;  %v588_v10 = vand.u32 4294901760, %v587_v38  ;;  %v10025_v38 = vand.u32 4294901760, %v8837_v7 }
 0x12c   : > { %v8878_v12 = vpack.c.bf16 %v588_v10, %v576_v39  ;;  %v10026_v39 = vand.u32 4294901760, %v8839_v9 }
 0x196   : > { %v391_v22 = vpop.permute.xlu1 %390 }
 0x197   : > { %v393_v34 = vmul.f32 %v391_v22, %v8709_v13  ;;  %v567_v13 = vsub.f32 %v8789_v48, %v430_v50  ;;  %v556_v22 = vand.u32 4294901760, %v555_v43  ;;  %v591_v50 = vsub.f32 %v8817_v60, %v438_v0 }
 0x198   : > { %v8888_v60 = vpack.c.bf16 %v8839_v9, %v8837_v7  ;;  %v8892_v0 = vpack.c.bf16 %v8848_v18, %v8842_v14  ;;  %v8912_v14 = vpack.c.bf16 %v10026_v39, %v10025_v38  ;;  %v8914_v18 = vpack.c.bf16 %v544_v31, %v532_v21 }
 0x199   : > { %395 = vrot.lane.b32.xlu0 %v393_v34, %s8618_s13  ;;  %v568_v24 = vand.u32 4294901760, %v567_v13  ;;  %v579_v34 = vsub.f32 %v345_v59, %v434_v63  ;;  %v557_v16 = vsub.f32 %v555_v43, %v556_v22  ;;  %v592_v58 = vand.u32 4294901760, %v591_v50 }
 0x19a   : > { %v400_v9 = vpop.permute.xlu1 %399 }
 0x19b   : > { %v569_v15 = vsub.f32 %v567_v13, %v568_v24  ;;  %v580_v48 = vand.u32 4294901760, %v579_v34  ;;  %v558_v55 = vand.u32 4294901760, %v557_v16  ;;  %v593_v63 = vsub.f32 %v591_v50, %v592_v58 }
 0x19c   : > { %v8896_v16 = vpack.c.bf16 %v567_v13, %v555_v43  ;;  %v8900_v49 = vpack.c.bf16 %v591_v50, %v579_v34  ;;  %v8920_v43 = vpack.c.bf16 %v586_v47, %v574_v27 }
 0x19d   : > { %v570_v57 = vand.u32 4294901760, %v569_v15  ;;  %v581_v56 = vsub.f32 %v579_v34, %v580_v48  ;;  %v594_v46 = vand.u32 4294901760, %v593_v63  ;;  %v8894_v15 = vpack.c.bf16 %v561_v36, %v549_v33  ;;  %v7239_v63 = vld [vmem:[%s8695_s11 + $0x2] sm:$0x3] }
 0x19e   : > { %v8916_v33 = vpack.c.bf16 %v562_v5, %v550_v40  ;;  %v8918_v36 = vpack.c.bf16 %v568_v24, %v556_v22  ;;  %v8922_v13 = vpack.c.bf16 %v592_v58, %v580_v48 }
 0x19f   : > { %v8876_v4 = vpack.c.bf16 %v570_v57, %v558_v55  ;;  %v582_v59 = vand.u32 4294901760, %v581_v56  ;;  %v10024_v55 = vand.u32 4294901760, %v8800_v53  ;;  %v507_v53 = vsub.f32 %v8732_v23, %v10027_v52 }
 0x1a0   : > { %v10029_v56 = vmov 0.0  }
 0x1a1   : > { %v8880_v62 = vpack.c.bf16 %v594_v46, %v582_v59  ;;  %v8906_v57 = vpack.c.bf16 %v10024_v55, %v502_v61  ;;  %v10028_v61 = vand.u32 4294901760, %v8737_v26  ;;  %v508_v21 = vand.u32 4294901760, %v507_v53  ;;  %v8997_v46 = vld [vmem:[%s10011_s2] ss:$0 sm:$0xff] }
 0x1a2   : > { %v1084_v59 = vstv %s1083_s14  ;;  %s5368_s14 = sadd.s32 6, %s8688_s29 }
 0x1a3   : > { %v519_v7 = vsub.f32 %v8737_v26, %v10028_v61  ;;  %v509_v44 = vsub.f32 %v507_v53, %v508_v21  ;;  %vm8999_vm6 = vcmp.eq.s32.totalorder %v1084_v59, 1  ;;  %p5369_p12 = scmp.lt.s32.totalorder %s5368_s14, 12 }
 0x1a5   : > { %v520_v31 = vand.u32 4294901760, %v519_v7  ;;  %v510_v34 = vand.u32 4294901760, %v509_v44  ;;  %v8942_v58 = vpack.c.bf16 %v519_v7, %v507_v53  ;;  %v366_v44 = vld [vmem:[#allocation5] sm:$0x3]  ;;  %s5370_s15 = scalar_select %p5369_p12, 1, 0 }
 0x1a7   : > { %v521_v22 = vsub.f32 %v519_v7, %v520_v31  ;;  %v8962_v10 = vpack.c.bf16 %v520_v31, %v508_v21 }
 0x1a9   : > { %v522_v23 = vand.u32 4294901760, %v521_v22 }
 0x1ab   : > { %v8932_v50 = vpack.c.bf16 %v522_v23, %v510_v34 }
 0x20b   : > { %v396_v40 = vpop.permute.xlu0 %395 }
 0x20c   : > { %v403_v5 = vsel %vm402_vm4, %v396_v40, %v400_v9 }
 0x20d   : > { %v406_v27 = vsel %vm404_vm5, %v403_v5, 0 }
 0x20e   : > { %v489_v24 = vand.u32 4294901760, %v406_v27 }
 0x210   : > { %v490_v25 = vsub.f32 %v406_v27, %v489_v24 }
 0x212   : > { %v491_v47 = vand.u32 4294901760, %v490_v25 }
 0x214   : > { %v492_v48 = vsub.f32 %v490_v25, %v491_v47 }
 0x216   : > { %v493_v26 = vand.u32 4294901760, %v492_v48 }
 0x218   : > { %494 = vmatmul.mubr.f32.vlgmr.msra.gmra.mrb[0].mxu0 %v493_v26 }
 0x219   : > { %7535 = vmatpush1.bf16.msra.mxu0 %v8932_v50  ;;  %644 = vmatprep.mubr.f32.mxu0 %v10029_v56 }
 0x21a   : > { %7537 = vmatprep.subr.bf16.mxu0 %v8869_v45 }
 0x21d   : > { %7539 = vmatpush1.bf16.msra.mxu0 %v8871_v2 }
 0x21e   : > { %7541 = vmatprep.subr.bf16.mxu0 %v8874_v37 }
 0x221   : > { %7543 = vmatpush1.bf16.msra.mxu0 %v8876_v4 }
 0x222   : > { %7545 = vmatprep.subr.bf16.mxu0 %v8878_v12 }
 0x225   : > { %7547 = vmatpush1.bf16.msra.mxu0 %v8880_v62 }
 0x226   : > { %7549 = vmatprep.subr.bf16.mxu0 %v8884_v28 }
 0x228   : > { %646 = vmatmul.mubr.f32.vlgmr.msra.gmra.mrb[0].mxu0 %v489_v24 }
 0x229   : > { %7551 = vmatpush1.bf16.msra.mxu0 %v8942_v58  ;;  %748 = vmatprep.mubr.f32.mxu0 %v10029_v56 }
 0x22a   : > { %7553 = vmatprep.subr.bf16.mxu0 %v8888_v60 }
 0x22d   : > { %7555 = vmatpush1.bf16.msra.mxu0 %v8892_v0 }
 0x22e   : > { %7557 = vmatprep.subr.bf16.mxu0 %v8894_v15 }
 0x231   : > { %7559 = vmatpush1.bf16.msra.mxu0 %v8896_v16 }
 0x232   : > { %7561 = vmatprep.subr.bf16.mxu0 %v8898_v35 }
 0x235   : > { %7563 = vmatpush1.bf16.msra.mxu0 %v8900_v49 }
 0x236   : > { %7565 = vmatprep.subr.bf16.mxu0 %v8741_v29 }
 0x238   : > { %751 = vmatmul.mubr.f32.vlgmr.msra.gmra.mrb[0].mxu0 %v490_v25 }
 0x239   : > { %7567 = vmatpush1.bf16.msra.mxu0 %v8747_v30  ;;  %837 = vmatprep.mubr.f32.mxu0 %v10029_v56 }
 0x23a   : > { %7569 = vmatprep.subr.bf16.mxu0 %v8770_v41 }
 0x23d   : > { %7571 = vmatpush1.bf16.msra.mxu0 %v8772_v42 }
 0x23e   : > { %7573 = vmatprep.subr.bf16.mxu0 %v8796_v51 }
 0x241   : > { %7575 = vmatpush1.bf16.msra.mxu0 %v8802_v54 }
 0x242   : > { %7577 = vmatprep.subr.bf16.mxu0 %v8825_v1 }
 0x245   : > { %7579 = vmatpush1.bf16.msra.mxu0 %v8835_v6 }
 0x246   : > { %7581 = vmatprep.subr.bf16.mxu0 %v8906_v57 }
 0x248   : > { %841 = vmatmul.mubr.f32.vlgmr.msra.gmra.mrb[0].mxu0 %v491_v47  ;;  %v9027_v47 = vsel %vm8999_vm6, %v8720_v20, %v8716_v17 }
 0x249   : > { %7583 = vmatpush1.bf16.msra.mxu0 %v8962_v10  ;;  %959 = vmatprep.mubr.f32.mxu0 %v10029_v56 }
 0x24a   : > { %7585 = vmatprep.subr.bf16.mxu0 %v8912_v14 }
 0x24d   : > { %7587 = vmatpush1.bf16.msra.mxu0 %v8914_v18 }
 0x24e   : > { %7589 = vmatprep.subr.bf16.mxu0 %v8916_v33 }
 0x251   : > { %7591 = vmatpush1.bf16.msra.mxu0 %v8918_v36 }
 0x252   : > { %7593 = vmatprep.subr.bf16.mxu0 %v8920_v43 }
 0x255   : > { %7595 = vmatpush1.bf16.msra.mxu0 %v8922_v13 }
 0x256   : > { %7597 = vmatprep.subr.bf16.mxu0 %v8741_v29 }
 0x258   : > { %961 = vmatmul.mubr.f32.vlgmr.msra.gmra.mrb[0].mxu0 %v489_v24 }
 0x259   : > { %7599 = vmatpush1.bf16.msra.mxu0 %v8747_v30  ;;  %1047 = vmatprep.mubr.f32.mxu0 %v10029_v56 }
 0x25a   : > { %7601 = vmatprep.subr.bf16.mxu0 %v8770_v41 }
 0x25d   : > { %7603 = vmatpush1.bf16.msra.mxu0 %v8772_v42 }
 0x25e   : > { %7605 = vmatprep.subr.bf16.mxu0 %v8796_v51 }
 0x261   : > { %7607 = vmatpush1.bf16.msra.mxu0 %v8802_v54 }
 0x262   : > { %7609 = vmatprep.subr.bf16.mxu0 %v8825_v1 }
 0x265   : > { %7611 = vmatpush1.bf16.msra.mxu0 %v8835_v6 }
 0x266   : > { %7709 = vmatprep.subr.bf16.mxu0 %v8741_v29 }
 0x268   : > { %1049 = vmatmul.mubr.f32.vlgmr.msra.gmra.mrb[0].mxu0 %v489_v24 }
 0x269   : > { %7711 = vmatpush1.bf16.msra.mxu0 %v8747_v30  ;;  %1923 = vmatprep.mubr.f32.mxu0 %v10029_v56 }
 0x26a   : > { %7713 = vmatprep.subr.bf16.mxu0 %v8770_v41 }
 0x26d   : > { %7715 = vmatpush1.bf16.msra.mxu0 %v8772_v42 }
 0x26e   : > { %7717 = vmatprep.subr.bf16.mxu0 %v8796_v51 }
 0x271   : > { %7719 = vmatpush1.bf16.msra.mxu0 %v8802_v54 }
 0x272   : > { %7721 = vmatprep.subr.bf16.mxu0 %v8825_v1 }
 0x275   : > { %7723 = vmatpush1.bf16.msra.mxu0 %v8835_v6 }
 0x276   : > { %7725 = vmatprep.subr.bf16.mxu0 %v8851_v19 }
 0x33b   : > { %v1050_v55 = vpop.f32.mrb[0].mxu0 }
 0x33c   : > { %v9006_v39 = vsel %vm8999_vm6, %v1050_v55, %v8698_v3  ;;  %v1052_v52 = vpop.f32.mrb[1].mxu0 }
 0x33d   : > { %v1095_v53 = vadd.f32 %v7239_v63, %v9006_v39  ;;  %v1055_v61 = vadd.f32 %v8997_v46, %v1052_v52 }
 0x33f   : > { %v1096_v7 = vmul.f32 %v1095_v53, %v8702_v8  ;;  %v1056_v9 = vmul.f32 %v1055_v61, %v8702_v8 }
 0x341   : > { %8530 = vtanh.f32 %v1096_v7 }
 0x342   : > { %8532 = vtanh.f32 %v1056_v9 }
 0x34b   : > { %v8531_v21 = vpop.eup %8530 }
 0x34c   : > { %v8533_v31 = vpop.eup %8532  ;;  %v1098_v40 = vmul.f32 %v8531_v21, %v8702_v8 }
 0x34d   : > { %v1058_v5 = vmul.f32 %v8533_v31, %v8702_v8 }
 0x34e   : > { %v1099_v3 = vadd.f32 %v1098_v40, %v8705_v11 }
 0x34f   : > { %v1059_v27 = vadd.f32 %v1058_v5, %v8705_v11 }
 0x350   : > { %1102 = vrot.lane.b32.xlu1 %v1099_v3, %s8617_s12  ;;  %v1100_v48 = vmul.f32 %v1099_v3, %v9027_v47 }
 0x351   : > { %1066 = vrot.lane.b32.xlu0 %v1059_v27, %s8617_s12 }
 0x355   : > { %1061 = vrot.lane.b32.xlu0 %v366_v44, %s8618_s13 }
 0x3c2   : > { %v1103_v22 = vpop.permute.xlu1 %1102 }
 0x3c3   : > { %v1105_v24 = vmul.f32 %v1103_v22, %v1099_v3  ;;  %v1067_v25 = vpop.permute.xlu0 %1066 }
 0x3c4   : > { %v1069_v34 = vmul.f32 %v1067_v25, %v1059_v27 }
 0x3c5   : > { %1107 = vrot.lane.b32.xlu0 %v1105_v24, %s8618_s13 }
 0x3c6   : > { %1071 = vrot.lane.b32.xlu1 %v1069_v34, %s8618_s13 }
 0x3c7   : > { %v9021_v23 = vpop.permute.xlu0 %1061 }
 0x3c8   : > { %v1064_v26 = vmul.f32 %v9021_v23, %v1059_v27 }
 0x437   : > { %v1108_v59 = vpop.permute.xlu0 %1107 }
 0x438   : > { %v1072_v63 = vpop.permute.xlu1 %1071  ;;  %v9031_v55 = vadd.f32 %v1108_v59, %v1100_v48  ;;  %v7240_v48 = vld [vmem:[%s8695_s11 + $0x4] sm:$0x3] }
 0x439   : > { %v9033_v52 = vadd.f32 %v1072_v63, %v1064_v26 }
 0x43a   : > { %8534 = vtanh.f32 %v9031_v55 }
 0x43b   : > { %8536 = vtanh.f32 %v9033_v52 }
 0x444   : > { %v8535_v53 = vpop.eup %8534 }
 0x445   : > { %v8537_v61 = vpop.eup %8536  ;;  %1113 = vrot.lane.b32.xlu0 %v8535_v53, %s8617_s12 }
 0x446   : > { %1077 = vrot.lane.b32.xlu1 %v8537_v61, %s8617_s12 }
 0x44a   : > { %1087 = vrot.lane.b32.xlu1 %v8754_v32, %s8620_s17 }
 0x4b7   : > { %v1114_v17 = vpop.permute.xlu0 %1113 }
 0x4b8   : > { %v1078_v20 = vpop.permute.xlu1 %1077  ;;  %v1116_v7 = vmul.f32 %v1114_v17, %v1099_v3 }
 0x4b9   : > { %v1080_v9 = vmul.f32 %v1078_v20, %v1059_v27  ;;  %v9105_v27 = vstv %s1800_s19 }
 0x4ba   : > { %1118 = vrot.lane.b32.xlu0 %v1116_v7, %s8618_s13  ;;  %vm1802_vm7 = vcmp.eq.s32.totalorder %v9105_v27, 1 }
 0x4bc   : > { %v1088_v21 = vpop.permute.xlu1 %1087 }
 0x4bd   : > { %v9044_v31 = vsel %vm8999_vm6, %v1080_v9, %v1088_v21 }
 0x4be   : > { %1122 = vrot.lane.b32.xlu1 %v9044_v31, %s8617_s12 }
 0x52c   : > { %v1119_v40 = vpop.permute.xlu0 %1118 }
 0x530   : > { %v1123_v5 = vpop.permute.xlu1 %1122 }
 0x531   : > { %v1125_v44 = vsel %vm402_vm4, %v1119_v40, %v1123_v5 }
 0x532   : > { %v1127_v32 = vsel %vm404_vm5, %v1125_v44, 0 }
 0x533   : > { %v1210_v22 = vand.u32 4294901760, %v1127_v32 }
 0x535   : > { %v1211_v24 = vsub.f32 %v1127_v32, %v1210_v22 }
 0x537   : > { %v1212_v3 = vand.u32 4294901760, %v1211_v24 }
 0x539   : > { %v1213_v25 = vsub.f32 %v1211_v24, %v1212_v3 }
 0x53b   : > { %v1214_v34 = vand.u32 4294901760, %v1213_v25 }
 0x53d   : > { %1215 = vmatmul.mubr.f32.vlgmr.msra.gmra.mrb[0].mxu1 %v1214_v34  ;;  %v9137_v34 = vsel %vm8999_vm6, %v9033_v52, %v9021_v23 }
 0x53e   : > { %7631 = vmatpush1.bf16.msra.mxu1 %v8932_v50  ;;  %1365 = vmatprep.mubr.f32.mxu1 %v10029_v56 }
 0x53f   : > { %7633 = vmatprep.subr.bf16.mxu1 %v8869_v45 }
 0x542   : > { %7635 = vmatpush1.bf16.msra.mxu1 %v8871_v2 }
 0x543   : > { %7637 = vmatprep.subr.bf16.mxu1 %v8874_v37 }
 0x546   : > { %7639 = vmatpush1.bf16.msra.mxu1 %v8876_v4 }
 0x547   : > { %7641 = vmatprep.subr.bf16.mxu1 %v8878_v12 }
 0x54a   : > { %7643 = vmatpush1.bf16.msra.mxu1 %v8880_v62 }
 0x54b   : > { %7645 = vmatprep.subr.bf16.mxu1 %v8884_v28 }
 0x54d   : > { %1367 = vmatmul.mubr.f32.vlgmr.msra.gmra.mrb[0].mxu1 %v1210_v22 }
 0x54e   : > { %7647 = vmatpush1.bf16.msra.mxu1 %v8942_v58  ;;  %1469 = vmatprep.mubr.f32.mxu1 %v10029_v56 }
 0x54f   : > { %7649 = vmatprep.subr.bf16.mxu1 %v8888_v60 }
 0x552   : > { %7651 = vmatpush1.bf16.msra.mxu1 %v8892_v0 }
 0x553   : > { %7653 = vmatprep.subr.bf16.mxu1 %v8894_v15 }
 0x556   : > { %7655 = vmatpush1.bf16.msra.mxu1 %v8896_v16 }
 0x557   : > { %7657 = vmatprep.subr.bf16.mxu1 %v8898_v35 }
 0x55a   : > { %7659 = vmatpush1.bf16.msra.mxu1 %v8900_v49 }
 0x55b   : > { %7661 = vmatprep.subr.bf16.mxu1 %v8741_v29 }
 0x55d   : > { %1472 = vmatmul.mubr.f32.vlgmr.msra.gmra.mrb[0].mxu1 %v1211_v24 }
 0x55e   : > { %7663 = vmatpush1.bf16.msra.mxu1 %v8747_v30  ;;  %1558 = vmatprep.mubr.f32.mxu1 %v10029_v56 }
 0x55f   : > { %7665 = vmatprep.subr.bf16.mxu1 %v8770_v41 }
 0x562   : > { %7667 = vmatpush1.bf16.msra.mxu1 %v8772_v42 }
 0x563   : > { %7669 = vmatprep.subr.bf16.mxu1 %v8796_v51 }
 0x566   : > { %7671 = vmatpush1.bf16.msra.mxu1 %v8802_v54 }
 0x567   : > { %7673 = vmatprep.subr.bf16.mxu1 %v8825_v1 }
 0x56a   : > { %7675 = vmatpush1.bf16.msra.mxu1 %v8835_v6 }
 0x56b   : > { %7677 = vmatprep.subr.bf16.mxu1 %v8906_v57 }
 0x56d   : > { %1562 = vmatmul.mubr.f32.vlgmr.msra.gmra.mrb[0].mxu1 %v1212_v3  ;;  %v9130_v3 = vsel %vm1802_vm7, %v9031_v55, %v9027_v47 }
 0x56e   : > { %7679 = vmatpush1.bf16.msra.mxu1 %v8962_v10  ;;  %1680 = vmatprep.mubr.f32.mxu1 %v10029_v56 }
 0x56f   : > { %7681 = vmatprep.subr.bf16.mxu1 %v8912_v14 }
 0x572   : > { %7683 = vmatpush1.bf16.msra.mxu1 %v8914_v18 }
 0x573   : > { %7685 = vmatprep.subr.bf16.mxu1 %v8916_v33 }
 0x576   : > { %7687 = vmatpush1.bf16.msra.mxu1 %v8918_v36 }
 0x577   : > { %7689 = vmatprep.subr.bf16.mxu1 %v8920_v43 }
 0x57a   : > { %7691 = vmatpush1.bf16.msra.mxu1 %v8922_v13 }
 0x57b   : > { %7693 = vmatprep.subr.bf16.mxu1 %v8741_v29 }
 0x57d   : > { %1682 = vmatmul.mubr.f32.vlgmr.msra.gmra.mrb[0].mxu1 %v1210_v22 }
 0x57e   : > { %7695 = vmatpush1.bf16.msra.mxu1 %v8747_v30  ;;  %1768 = vmatprep.mubr.f32.mxu1 %v10029_v56 }
 0x57f   : > { %7697 = vmatprep.subr.bf16.mxu1 %v8770_v41 }
 0x582   : > { %7699 = vmatpush1.bf16.msra.mxu1 %v8772_v42 }
 0x583   : > { %7701 = vmatprep.subr.bf16.mxu1 %v8796_v51 }
 0x586   : > { %7703 = vmatpush1.bf16.msra.mxu1 %v8802_v54 }
 0x587   : > { %7705 = vmatprep.subr.bf16.mxu1 %v8825_v1 }
 0x58a   : > { %7707 = vmatpush1.bf16.msra.mxu1 %v8835_v6 }
 0x58b   : > { %7805 = vmatprep.subr.bf16.mxu1 %v8741_v29 }
 0x58d   : > { %1770 = vmatmul.mubr.f32.vlgmr.msra.gmra.mrb[0].mxu1 %v1210_v22 }
 0x58e   : > { %7807 = vmatpush1.bf16.msra.mxu1 %v8747_v30  ;;  %2637 = vmatprep.mubr.f32.mxu1 %v10029_v56 }
 0x58f   : > { %7809 = vmatprep.subr.bf16.mxu1 %v8770_v41 }
 0x592   : > { %7811 = vmatpush1.bf16.msra.mxu1 %v8772_v42 }
 0x593   : > { %7813 = vmatprep.subr.bf16.mxu1 %v8796_v51 }
 0x596   : > { %7815 = vmatpush1.bf16.msra.mxu1 %v8802_v54 }
 0x597   : > { %7817 = vmatprep.subr.bf16.mxu1 %v8825_v1 }
 0x59a   : > { %7819 = vmatpush1.bf16.msra.mxu1 %v8835_v6 }
 0x59b   : > { %7821 = vmatprep.subr.bf16.mxu1 %v8851_v19 }
 0x660   : > { %v1771_v26 = vpop.f32.mrb[0].mxu1 }
 0x661   : > { %v9112_v59 = vsel %vm1802_vm7, %v1771_v26, %v9006_v39  ;;  %v1773_v63 = vpop.f32.mrb[1].mxu1 }
 0x662   : > { %v1809_v53 = vadd.f32 %v7240_v48, %v9112_v59  ;;  %v1776_v61 = vadd.f32 %v8997_v46, %v1773_v63 }
 0x664   : > { %v1810_v17 = vmul.f32 %v1809_v53, %v8702_v8  ;;  %v1777_v20 = vmul.f32 %v1776_v61, %v8702_v8 }
 0x666   : > { %8538 = vtanh.f32 %v1810_v17 }
 0x667   : > { %8540 = vtanh.f32 %v1777_v20 }
 0x670   : > { %v8539_v7 = vpop.eup %8538 }
 0x671   : > { %v8541_v9 = vpop.eup %8540  ;;  %v1812_v21 = vmul.f32 %v8539_v7, %v8702_v8 }
 0x672   : > { %v1779_v40 = vmul.f32 %v8541_v9, %v8702_v8 }
 0x673   : > { %v1813_v39 = vadd.f32 %v1812_v21, %v8705_v11 }
 0x674   : > { %v1780_v5 = vadd.f32 %v1779_v40, %v8705_v11 }
 0x675   : > { %1816 = vrot.lane.b32.xlu1 %v1813_v39, %s8617_s12  ;;  %v1814_v25 = vmul.f32 %v1813_v39, %v9130_v3 }
 0x676   : > { %1783 = vrot.lane.b32.xlu0 %v1780_v5, %s8617_s12  ;;  %v1781_v26 = vmul.f32 %v1780_v5, %v9137_v34 }
 0x6e7   : > { %v1817_v44 = vpop.permute.xlu1 %1816 }
 0x6e8   : > { %v1819_v32 = vmul.f32 %v1817_v44, %v1813_v39  ;;  %v1784_v22 = vpop.permute.xlu0 %1783 }
 0x6e9   : > { %v1786_v24 = vmul.f32 %v1784_v22, %v1780_v5 }
 0x6ea   : > { %1821 = vrot.lane.b32.xlu1 %v1819_v32, %s8618_s13 }
 0x6eb   : > { %1788 = vrot.lane.b32.xlu0 %v1786_v24, %s8618_s13  ;;  %v7241_v24 = vld [vmem:[%s8695_s11 + $0x6] sm:$0x3] }
 0x75c   : > { %v1822_v48 = vpop.permute.xlu1 %1821 }
 0x75d   : > { %v9140_v63 = vadd.f32 %v1822_v48, %v1814_v25  ;;  %v1789_v53 = vpop.permute.xlu0 %1788 }
 0x75e   : > { %v9142_v61 = vadd.f32 %v1789_v53, %v1781_v26 }
 0x75f   : > { %8542 = vtanh.f32 %v9140_v63 }
 0x760   : > { %8544 = vtanh.f32 %v9142_v61 }
 0x769   : > { %v8543_v47 = vpop.eup %8542 }
 0x76a   : > { %v8545_v55 = vpop.eup %8544  ;;  %1827 = vrot.lane.b32.xlu1 %v8543_v47, %s8617_s12 }
 0x76b   : > { %1794 = vrot.lane.b32.xlu0 %v8545_v55, %s8617_s12 }
 0x7dc   : > { %v1828_v38 = vpop.permute.xlu1 %1827 }
 0x7dd   : > { %v1830_v23 = vmul.f32 %v1828_v38, %v1813_v39  ;;  %v1795_v52 = vpop.permute.xlu0 %1794 }
 0x7de   : > { %v1797_v17 = vmul.f32 %v1795_v52, %v1780_v5 }
 0x7df   : > { %1832 = vrot.lane.b32.xlu0 %v1830_v23, %s8618_s13 }
 0x7e0   : > { %v9152_v20 = vsel %vm1802_vm7, %v1797_v17, %v9044_v31  ;;  %v9213_v31 = vstv %s2514_s21 }
 0x7e1   : > { %1836 = vrot.lane.b32.xlu1 %v9152_v20, %s8617_s12  ;;  %vm2516_vm8 = vcmp.eq.s32.totalorder %v9213_v31, 1 }
 0x851   : > { %v1833_v7 = vpop.permute.xlu0 %1832 }
 0x853   : > { %v1837_v9 = vpop.permute.xlu1 %1836 }
 0x854   : > { %v1839_v21 = vsel %vm402_vm4, %v1833_v7, %v1837_v9 }
 0x855   : > { %v1841_v40 = vsel %vm404_vm5, %v1839_v21, 0 }
 0x856   : > { %v1924_v44 = vand.u32 4294901760, %v1841_v40 }
 0x858   : > { %v1925_v39 = vsub.f32 %v1841_v40, %v1924_v44 }
 0x85a   : > { %v1926_v32 = vand.u32 4294901760, %v1925_v39 }
 0x85c   : > { %v1927_v5 = vsub.f32 %v1925_v39, %v1926_v32 }
 0x85e   : > { %v1928_v22 = vand.u32 4294901760, %v1927_v5 }
 0x860   : > { %1929 = vmatmul.mubr.f32.vlgmr.msra.gmra.mrb[2].mxu0 %v1928_v22  ;;  %v9245_v22 = vsel %vm1802_vm7, %v9142_v61, %v9137_v34 }
 0x861   : > { %7727 = vmatpush1.bf16.msra.mxu0 %v8932_v50  ;;  %2079 = vmatprep.mubr.f32.mxu0 %v10029_v56 }
 0x862   : > { %7729 = vmatprep.subr.bf16.mxu0 %v8869_v45 }
 0x865   : > { %7731 = vmatpush1.bf16.msra.mxu0 %v8871_v2 }
 0x866   : > { %7733 = vmatprep.subr.bf16.mxu0 %v8874_v37 }
 0x869   : > { %7735 = vmatpush1.bf16.msra.mxu0 %v8876_v4 }
 0x86a   : > { %7737 = vmatprep.subr.bf16.mxu0 %v8878_v12 }
 0x86d   : > { %7739 = vmatpush1.bf16.msra.mxu0 %v8880_v62 }
 0x86e   : > { %7741 = vmatprep.subr.bf16.mxu0 %v8884_v28 }
 0x870   : > { %2081 = vmatmul.mubr.f32.vlgmr.msra.gmra.mrb[2].mxu0 %v1924_v44 }
 0x871   : > { %7743 = vmatpush1.bf16.msra.mxu0 %v8942_v58  ;;  %2183 = vmatprep.mubr.f32.mxu0 %v10029_v56 }
 0x872   : > { %7745 = vmatprep.subr.bf16.mxu0 %v8888_v60 }
 0x875   : > { %7747 = vmatpush1.bf16.msra.mxu0 %v8892_v0 }
 0x876   : > { %7749 = vmatprep.subr.bf16.mxu0 %v8894_v15 }
 0x879   : > { %7751 = vmatpush1.bf16.msra.mxu0 %v8896_v16 }
 0x87a   : > { %7753 = vmatprep.subr.bf16.mxu0 %v8898_v35 }
 0x87d   : > { %7755 = vmatpush1.bf16.msra.mxu0 %v8900_v49 }
 0x87e   : > { %7757 = vmatprep.subr.bf16.mxu0 %v8741_v29 }
 0x880   : > { %2186 = vmatmul.mubr.f32.vlgmr.msra.gmra.mrb[2].mxu0 %v1925_v39 }
 0x881   : > { %7759 = vmatpush1.bf16.msra.mxu0 %v8747_v30  ;;  %2272 = vmatprep.mubr.f32.mxu0 %v10029_v56 }
 0x882   : > { %7761 = vmatprep.subr.bf16.mxu0 %v8770_v41 }
 0x885   : > { %7763 = vmatpush1.bf16.msra.mxu0 %v8772_v42 }
 0x886   : > { %7765 = vmatprep.subr.bf16.mxu0 %v8796_v51 }
 0x889   : > { %7767 = vmatpush1.bf16.msra.mxu0 %v8802_v54 }
 0x88a   : > { %7769 = vmatprep.subr.bf16.mxu0 %v8825_v1 }
 0x88d   : > { %7771 = vmatpush1.bf16.msra.mxu0 %v8835_v6 }
 0x88e   : > { %7773 = vmatprep.subr.bf16.mxu0 %v8906_v57 }
 0x890   : > { %2276 = vmatmul.mubr.f32.vlgmr.msra.gmra.mrb[2].mxu0 %v1926_v32  ;;  %v9238_v32 = vsel %vm2516_vm8, %v9140_v63, %v9130_v3 }
 0x891   : > { %7775 = vmatpush1.bf16.msra.mxu0 %v8962_v10  ;;  %2394 = vmatprep.mubr.f32.mxu0 %v10029_v56 }
 0x892   : > { %7777 = vmatprep.subr.bf16.mxu0 %v8912_v14 }
 0x895   : > { %7779 = vmatpush1.bf16.msra.mxu0 %v8914_v18 }
 0x896   : > { %7781 = vmatprep.subr.bf16.mxu0 %v8916_v33 }
 0x899   : > { %7783 = vmatpush1.bf16.msra.mxu0 %v8918_v36 }
 0x89a   : > { %7785 = vmatprep.subr.bf16.mxu0 %v8920_v43 }
 0x89d   : > { %7787 = vmatpush1.bf16.msra.mxu0 %v8922_v13 }
 0x89e   : > { %7789 = vmatprep.subr.bf16.mxu0 %v8741_v29 }
 0x8a0   : > { %2396 = vmatmul.mubr.f32.vlgmr.msra.gmra.mrb[2].mxu0 %v1924_v44 }
 0x8a1   : > { %7791 = vmatpush1.bf16.msra.mxu0 %v8747_v30  ;;  %2482 = vmatprep.mubr.f32.mxu0 %v10029_v56 }
 0x8a2   : > { %7793 = vmatprep.subr.bf16.mxu0 %v8770_v41 }
 0x8a5   : > { %7795 = vmatpush1.bf16.msra.mxu0 %v8772_v42 }
 0x8a6   : > { %7797 = vmatprep.subr.bf16.mxu0 %v8796_v51 }
 0x8a9   : > { %7799 = vmatpush1.bf16.msra.mxu0 %v8802_v54 }
 0x8aa   : > { %7801 = vmatprep.subr.bf16.mxu0 %v8825_v1 }
 0x8ad   : > { %7803 = vmatpush1.bf16.msra.mxu0 %v8835_v6 }
 0x8ae   : > { %7901 = vmatprep.subr.bf16.mxu0 %v8741_v29 }
 0x8b0   : > { %2484 = vmatmul.mubr.f32.vlgmr.msra.gmra.mrb[2].mxu0 %v1924_v44 }
 0x8b1   : > { %7903 = vmatpush1.bf16.msra.mxu0 %v8747_v30  ;;  %3351 = vmatprep.mubr.f32.mxu0 %v10029_v56 }
 0x8b2   : > { %7905 = vmatprep.subr.bf16.mxu0 %v8770_v41 }
 0x8b5   : > { %7907 = vmatpush1.bf16.msra.mxu0 %v8772_v42 }
 0x8b6   : > { %7909 = vmatprep.subr.bf16.mxu0 %v8796_v51 }
 0x8b9   : > { %7911 = vmatpush1.bf16.msra.mxu0 %v8802_v54 }
 0x8ba   : > { %7913 = vmatprep.subr.bf16.mxu0 %v8825_v1 }
 0x8bd   : > { %7915 = vmatpush1.bf16.msra.mxu0 %v8835_v6 }
 0x8be   : > { %7917 = vmatprep.subr.bf16.mxu0 %v8851_v19 }
 0x983   : > { %v2485_v25 = vpop.f32.mrb[2].mxu0 }
 0x984   : > { %v9220_v48 = vsel %vm2516_vm8, %v2485_v25, %v9112_v59  ;;  %v2487_v26 = vpop.f32.mrb[3].mxu0 }
 0x985   : > { %v2523_v53 = vadd.f32 %v7241_v24, %v9220_v48  ;;  %v2490_v47 = vadd.f32 %v8997_v46, %v2487_v26 }
 0x987   : > { %v2524_v55 = vmul.f32 %v2523_v53, %v8702_v8  ;;  %v2491_v38 = vmul.f32 %v2490_v47, %v8702_v8 }
 0x989   : > { %8546 = vtanh.f32 %v2524_v55 }
 0x98a   : > { %8548 = vtanh.f32 %v2491_v38 }
 0x993   : > { %v8547_v23 = vpop.eup %8546 }
 0x994   : > { %v8549_v52 = vpop.eup %8548  ;;  %v2526_v17 = vmul.f32 %v8547_v23, %v8702_v8 }
 0x995   : > { %v2493_v7 = vmul.f32 %v8549_v52, %v8702_v8 }
 0x996   : > { %v2527_v59 = vadd.f32 %v2526_v17, %v8705_v11 }
 0x997   : > { %v2494_v9 = vadd.f32 %v2493_v7, %v8705_v11 }
 0x998   : > { %2530 = vrot.lane.b32.xlu1 %v2527_v59, %s8617_s12  ;;  %v2528_v5 = vmul.f32 %v2527_v59, %v9238_v32 }
 0x999   : > { %2497 = vrot.lane.b32.xlu0 %v2494_v9, %s8617_s12  ;;  %v2495_v25 = vmul.f32 %v2494_v9, %v9245_v22 }
 0xa0a   : > { %v2531_v21 = vpop.permute.xlu1 %2530 }
 0xa0b   : > { %v2533_v40 = vmul.f32 %v2531_v21, %v2527_v59  ;;  %v2498_v44 = vpop.permute.xlu0 %2497 }
 0xa0c   : > { %v2500_v39 = vmul.f32 %v2498_v44, %v2494_v9 }
 0xa0d   : > { %2535 = vrot.lane.b32.xlu1 %v2533_v40, %s8618_s13 }
 0xa0e   : > { %2502 = vrot.lane.b32.xlu0 %v2500_v39, %s8618_s13  ;;  %v7242_v39 = vld [vmem:[%s8695_s11 + $0x8] sm:$0x3] }
 0xa7f   : > { %v2536_v24 = vpop.permute.xlu1 %2535 }
 0xa80   : > { %v9248_v26 = vadd.f32 %v2536_v24, %v2528_v5  ;;  %v2503_v53 = vpop.permute.xlu0 %2502 }
 0xa81   : > { %v9250_v47 = vadd.f32 %v2503_v53, %v2495_v25 }
 0xa82   : > { %8550 = vtanh.f32 %v9248_v26 }
 0xa83   : > { %8552 = vtanh.f32 %v9250_v47 }
 0xa8c   : > { %v8551_v3 = vpop.eup %8550 }
 0xa8d   : > { %v8553_v63 = vpop.eup %8552  ;;  %2541 = vrot.lane.b32.xlu1 %v8551_v3, %s8617_s12 }
 0xa8e   : > { %2508 = vrot.lane.b32.xlu0 %v8553_v63, %s8617_s12 }
 0xaff   : > { %v2542_v27 = vpop.permute.xlu1 %2541 }
 0xb00   : > { %v2544_v34 = vmul.f32 %v2542_v27, %v2527_v59  ;;  %v2509_v61 = vpop.permute.xlu0 %2508 }
 0xb01   : > { %v2511_v55 = vmul.f32 %v2509_v61, %v2494_v9 }
 0xb02   : > { %2546 = vrot.lane.b32.xlu0 %v2544_v34, %s8618_s13 }
 0xb03   : > { %v9260_v38 = vsel %vm2516_vm8, %v2511_v55, %v9152_v20  ;;  %v9321_v20 = vstv %s3228_s23 }
 0xb04   : > { %2550 = vrot.lane.b32.xlu1 %v9260_v38, %s8617_s12  ;;  %vm3230_vm9 = vcmp.eq.s32.totalorder %v9321_v20, 1 }
 0xb74   : > { %v2547_v23 = vpop.permute.xlu0 %2546 }
 0xb76   : > { %v2551_v52 = vpop.permute.xlu1 %2550 }
 0xb77   : > { %v2553_v17 = vsel %vm402_vm4, %v2547_v23, %v2551_v52 }
 0xb78   : > { %v2555_v7 = vsel %vm404_vm5, %v2553_v17, 0 }
 0xb79   : > { %v2638_v21 = vand.u32 4294901760, %v2555_v7 }
 0xb7b   : > { %v2639_v59 = vsub.f32 %v2555_v7, %v2638_v21 }
 0xb7d   : > { %v2640_v40 = vand.u32 4294901760, %v2639_v59 }
 0xb7f   : > { %v2641_v9 = vsub.f32 %v2639_v59, %v2640_v40 }
 0xb81   : > { %v2642_v44 = vand.u32 4294901760, %v2641_v9 }
 0xb83   : > { %2643 = vmatmul.mubr.f32.vlgmr.msra.gmra.mrb[2].mxu1 %v2642_v44  ;;  %v9353_v44 = vsel %vm2516_vm8, %v9250_v47, %v9245_v22 }
 0xb84   : > { %7823 = vmatpush1.bf16.msra.mxu1 %v8932_v50  ;;  %2793 = vmatprep.mubr.f32.mxu1 %v10029_v56 }
 0xb85   : > { %7825 = vmatprep.subr.bf16.mxu1 %v8869_v45 }
 0xb88   : > { %7827 = vmatpush1.bf16.msra.mxu1 %v8871_v2 }
 0xb89   : > { %7829 = vmatprep.subr.bf16.mxu1 %v8874_v37 }
 0xb8c   : > { %7831 = vmatpush1.bf16.msra.mxu1 %v8876_v4 }
 0xb8d   : > { %7833 = vmatprep.subr.bf16.mxu1 %v8878_v12 }
 0xb90   : > { %7835 = vmatpush1.bf16.msra.mxu1 %v8880_v62 }
 0xb91   : > { %7837 = vmatprep.subr.bf16.mxu1 %v8884_v28 }
 0xb93   : > { %2795 = vmatmul.mubr.f32.vlgmr.msra.gmra.mrb[2].mxu1 %v2638_v21 }
 0xb94   : > { %7839 = vmatpush1.bf16.msra.mxu1 %v8942_v58  ;;  %2897 = vmatprep.mubr.f32.mxu1 %v10029_v56 }
 0xb95   : > { %7841 = vmatprep.subr.bf16.mxu1 %v8888_v60 }
 0xb98   : > { %7843 = vmatpush1.bf16.msra.mxu1 %v8892_v0 }
 0xb99   : > { %7845 = vmatprep.subr.bf16.mxu1 %v8894_v15 }
 0xb9c   : > { %7847 = vmatpush1.bf16.msra.mxu1 %v8896_v16 }
 0xb9d   : > { %7849 = vmatprep.subr.bf16.mxu1 %v8898_v35 }
 0xba0   : > { %7851 = vmatpush1.bf16.msra.mxu1 %v8900_v49 }
 0xba1   : > { %7853 = vmatprep.subr.bf16.mxu1 %v8741_v29 }
 0xba3   : > { %2900 = vmatmul.mubr.f32.vlgmr.msra.gmra.mrb[2].mxu1 %v2639_v59 }
 0xba4   : > { %7855 = vmatpush1.bf16.msra.mxu1 %v8747_v30  ;;  %2986 = vmatprep.mubr.f32.mxu1 %v10029_v56 }
 0xba5   : > { %7857 = vmatprep.subr.bf16.mxu1 %v8770_v41 }
 0xba8   : > { %7859 = vmatpush1.bf16.msra.mxu1 %v8772_v42 }
 0xba9   : > { %7861 = vmatprep.subr.bf16.mxu1 %v8796_v51 }
 0xbac   : > { %7863 = vmatpush1.bf16.msra.mxu1 %v8802_v54 }
 0xbad   : > { %7865 = vmatprep.subr.bf16.mxu1 %v8825_v1 }
 0xbb0   : > { %7867 = vmatpush1.bf16.msra.mxu1 %v8835_v6 }
 0xbb1   : > { %7869 = vmatprep.subr.bf16.mxu1 %v8906_v57 }
 0xbb3   : > { %2990 = vmatmul.mubr.f32.vlgmr.msra.gmra.mrb[2].mxu1 %v2640_v40  ;;  %v9346_v40 = vsel %vm3230_vm9, %v9248_v26, %v9238_v32 }
 0xbb4   : > { %7871 = vmatpush1.bf16.msra.mxu1 %v8962_v10  ;;  %3108 = vmatprep.mubr.f32.mxu1 %v10029_v56 }
 0xbb5   : > { %7873 = vmatprep.subr.bf16.mxu1 %v8912_v14 }
 0xbb8   : > { %7875 = vmatpush1.bf16.msra.mxu1 %v8914_v18 }
 0xbb9   : > { %7877 = vmatprep.subr.bf16.mxu1 %v8916_v33 }
 0xbbc   : > { %7879 = vmatpush1.bf16.msra.mxu1 %v8918_v36 }
 0xbbd   : > { %7881 = vmatprep.subr.bf16.mxu1 %v8920_v43 }
 0xbc0   : > { %7883 = vmatpush1.bf16.msra.mxu1 %v8922_v13 }
 0xbc1   : > { %7885 = vmatprep.subr.bf16.mxu1 %v8741_v29 }
 0xbc3   : > { %3110 = vmatmul.mubr.f32.vlgmr.msra.gmra.mrb[2].mxu1 %v2638_v21 }
 0xbc4   : > { %7887 = vmatpush1.bf16.msra.mxu1 %v8747_v30  ;;  %3196 = vmatprep.mubr.f32.mxu1 %v10029_v56 }
 0xbc5   : > { %7889 = vmatprep.subr.bf16.mxu1 %v8770_v41 }
 0xbc8   : > { %7891 = vmatpush1.bf16.msra.mxu1 %v8772_v42 }
 0xbc9   : > { %7893 = vmatprep.subr.bf16.mxu1 %v8796_v51 }
 0xbcc   : > { %7895 = vmatpush1.bf16.msra.mxu1 %v8802_v54 }
 0xbcd   : > { %7897 = vmatprep.subr.bf16.mxu1 %v8825_v1 }
 0xbd0   : > { %7899 = vmatpush1.bf16.msra.mxu1 %v8835_v6 }
 0xbd1   : > { %7997 = vmatprep.subr.bf16.mxu1 %v8741_v29 }
 0xbd3   : > { %3198 = vmatmul.mubr.f32.vlgmr.msra.gmra.mrb[2].mxu1 %v2638_v21 }
 0xbd4   : > { %7999 = vmatpush1.bf16.msra.mxu1 %v8747_v30  ;;  %4065 = vmatprep.mubr.f32.mxu1 %v10029_v56 }
 0xbd5   : > { %8001 = vmatprep.subr.bf16.mxu1 %v8770_v41 }
 0xbd8   : > { %8003 = vmatpush1.bf16.msra.mxu1 %v8772_v42 }
 0xbd9   : > { %8005 = vmatprep.subr.bf16.mxu1 %v8796_v51 }
 0xbdc   : > { %8007 = vmatpush1.bf16.msra.mxu1 %v8802_v54 }
 0xbdd   : > { %8009 = vmatprep.subr.bf16.mxu1 %v8825_v1 }
 0xbe0   : > { %8011 = vmatpush1.bf16.msra.mxu1 %v8835_v6 }
 0xbe1   : > { %8013 = vmatprep.subr.bf16.mxu1 %v8851_v19 }
 0xca6   : > { %v3199_v5 = vpop.f32.mrb[2].mxu1 }
 0xca7   : > { %v9328_v24 = vsel %vm3230_vm9, %v3199_v5, %v9220_v48  ;;  %v3201_v25 = vpop.f32.mrb[3].mxu1 }
 0xca8   : > { %v3237_v53 = vadd.f32 %v7242_v39, %v9328_v24  ;;  %v3204_v3 = vadd.f32 %v8997_v46, %v3201_v25 }
 0xcaa   : > { %v3238_v63 = vmul.f32 %v3237_v53, %v8702_v8  ;;  %v3205_v27 = vmul.f32 %v3204_v3, %v8702_v8 }
 0xcac   : > { %8554 = vtanh.f32 %v3238_v63 }
 0xcad   : > { %8556 = vtanh.f32 %v3205_v27 }
 0xcb6   : > { %v8555_v34 = vpop.eup %8554 }
 0xcb7   : > { %v8557_v61 = vpop.eup %8556  ;;  %v3240_v55 = vmul.f32 %v8555_v34, %v8702_v8 }
 0xcb8   : > { %v3207_v23 = vmul.f32 %v8557_v61, %v8702_v8 }
 0xcb9   : > { %v3241_v48 = vadd.f32 %v3240_v55, %v8705_v11 }
 0xcba   : > { %v3208_v52 = vadd.f32 %v3207_v23, %v8705_v11 }
 0xcbb   : > { %3244 = vrot.lane.b32.xlu1 %v3241_v48, %s8617_s12  ;;  %v3242_v9 = vmul.f32 %v3241_v48, %v9346_v40 }
 0xcbc   : > { %3211 = vrot.lane.b32.xlu0 %v3208_v52, %s8617_s12  ;;  %v3209_v5 = vmul.f32 %v3208_v52, %v9353_v44 }
 0xd2d   : > { %v3245_v17 = vpop.permute.xlu1 %3244 }
 0xd2e   : > { %v3247_v7 = vmul.f32 %v3245_v17, %v3241_v48  ;;  %v3212_v21 = vpop.permute.xlu0 %3211 }
 0xd2f   : > { %v3214_v59 = vmul.f32 %v3212_v21, %v3208_v52 }
 0xd30   : > { %3249 = vrot.lane.b32.xlu1 %v3247_v7, %s8618_s13 }
 0xd31   : > { %3216 = vrot.lane.b32.xlu0 %v3214_v59, %s8618_s13  ;;  %v7243_v59 = vld [vmem:[%s8695_s11 + $0xa] sm:$0x3] }
 0xda2   : > { %v3250_v39 = vpop.permute.xlu1 %3249 }
 0xda3   : > { %v9356_v25 = vadd.f32 %v3250_v39, %v3242_v9  ;;  %v3217_v53 = vpop.permute.xlu0 %3216 }
 0xda4   : > { %v9358_v3 = vadd.f32 %v3217_v53, %v3209_v5 }
 0xda5   : > { %8558 = vtanh.f32 %v9356_v25 }
 0xda6   : > { %8560 = vtanh.f32 %v9358_v3 }
 0xdaf   : > { %v8559_v32 = vpop.eup %8558 }
 0xdb0   : > { %v8561_v26 = vpop.eup %8560  ;;  %3255 = vrot.lane.b32.xlu1 %v8559_v32, %s8617_s12 }
 0xdb1   : > { %3222 = vrot.lane.b32.xlu0 %v8561_v26, %s8617_s12 }
 0xe22   : > { %v3256_v31 = vpop.permute.xlu1 %3255 }
 0xe23   : > { %v3258_v22 = vmul.f32 %v3256_v31, %v3241_v48  ;;  %v3223_v47 = vpop.permute.xlu0 %3222 }
 0xe24   : > { %v3225_v63 = vmul.f32 %v3223_v47, %v3208_v52 }
 0xe25   : > { %3260 = vrot.lane.b32.xlu0 %v3258_v22, %s8618_s13 }
 0xe26   : > { %v9368_v27 = vsel %vm3230_vm9, %v3225_v63, %v9260_v38  ;;  %v9429_v38 = vstv %s3942_s25 }
 0xe27   : > { %3264 = vrot.lane.b32.xlu1 %v9368_v27, %s8617_s12  ;;  %vm3944_vm10 = vcmp.eq.s32.totalorder %v9429_v38, 1 }
 0xe97   : > { %v3261_v34 = vpop.permute.xlu0 %3260 }
 0xe99   : > { %v3265_v61 = vpop.permute.xlu1 %3264 }
 0xe9a   : > { %v3267_v55 = vsel %vm402_vm4, %v3261_v34, %v3265_v61 }
 0xe9b   : > { %v3269_v23 = vsel %vm404_vm5, %v3267_v55, 0 }
 0xe9c   : > { %v3352_v17 = vand.u32 4294901760, %v3269_v23 }
 0xe9e   : > { %v3353_v48 = vsub.f32 %v3269_v23, %v3352_v17 }
 0xea0   : > { %v3354_v7 = vand.u32 4294901760, %v3353_v48 }
 0xea2   : > { %v3355_v52 = vsub.f32 %v3353_v48, %v3354_v7 }
 0xea4   : > { %v3356_v21 = vand.u32 4294901760, %v3355_v52  ;;  %v9461_v52 = vsel %vm3230_vm9, %v9358_v3, %v9353_v44 }
 0xea6   : > { %3357 = vmatmul.mubr.f32.vlgmr.msra.gmra.mrb[4].mxu0 %v3356_v21 }
 0xea7   : > { %7919 = vmatpush1.bf16.msra.mxu0 %v8932_v50  ;;  %3507 = vmatprep.mubr.f32.mxu0 %v10029_v56 }
 0xea8   : > { %7921 = vmatprep.subr.bf16.mxu0 %v8869_v45 }
 0xeab   : > { %7923 = vmatpush1.bf16.msra.mxu0 %v8871_v2 }
 0xeac   : > { %7925 = vmatprep.subr.bf16.mxu0 %v8874_v37 }
 0xeaf   : > { %7927 = vmatpush1.bf16.msra.mxu0 %v8876_v4 }
 0xeb0   : > { %7929 = vmatprep.subr.bf16.mxu0 %v8878_v12 }
 0xeb3   : > { %7931 = vmatpush1.bf16.msra.mxu0 %v8880_v62 }
 0xeb4   : > { %7933 = vmatprep.subr.bf16.mxu0 %v8884_v28 }
 0xeb6   : > { %3509 = vmatmul.mubr.f32.vlgmr.msra.gmra.mrb[4].mxu0 %v3352_v17 }
 0xeb7   : > { %7935 = vmatpush1.bf16.msra.mxu0 %v8942_v58  ;;  %3611 = vmatprep.mubr.f32.mxu0 %v10029_v56 }
 0xeb8   : > { %7937 = vmatprep.subr.bf16.mxu0 %v8888_v60 }
 0xebb   : > { %7939 = vmatpush1.bf16.msra.mxu0 %v8892_v0 }
 0xebc   : > { %7941 = vmatprep.subr.bf16.mxu0 %v8894_v15 }
 0xebf   : > { %7943 = vmatpush1.bf16.msra.mxu0 %v8896_v16 }
 0xec0   : > { %7945 = vmatprep.subr.bf16.mxu0 %v8898_v35 }
 0xec3   : > { %7947 = vmatpush1.bf16.msra.mxu0 %v8900_v49 }
 0xec4   : > { %7949 = vmatprep.subr.bf16.mxu0 %v8741_v29 }
 0xec6   : > { %3614 = vmatmul.mubr.f32.vlgmr.msra.gmra.mrb[4].mxu0 %v3353_v48  ;;  %v9454_v48 = vsel %vm3944_vm10, %v9356_v25, %v9346_v40 }
 0xec7   : > { %7951 = vmatpush1.bf16.msra.mxu0 %v8747_v30  ;;  %3700 = vmatprep.mubr.f32.mxu0 %v10029_v56 }
 0xec8   : > { %7953 = vmatprep.subr.bf16.mxu0 %v8770_v41 }
 0xecb   : > { %7955 = vmatpush1.bf16.msra.mxu0 %v8772_v42 }
 0xecc   : > { %7957 = vmatprep.subr.bf16.mxu0 %v8796_v51 }
 0xecf   : > { %7959 = vmatpush1.bf16.msra.mxu0 %v8802_v54 }
 0xed0   : > { %7961 = vmatprep.subr.bf16.mxu0 %v8825_v1 }
 0xed3   : > { %7963 = vmatpush1.bf16.msra.mxu0 %v8835_v6 }
 0xed4   : > { %7965 = vmatprep.subr.bf16.mxu0 %v8906_v57 }
 0xed6   : > { %3704 = vmatmul.mubr.f32.vlgmr.msra.gmra.mrb[4].mxu0 %v3354_v7 }
 0xed7   : > { %7967 = vmatpush1.bf16.msra.mxu0 %v8962_v10  ;;  %3822 = vmatprep.mubr.f32.mxu0 %v10029_v56 }
 0xed8   : > { %7969 = vmatprep.subr.bf16.mxu0 %v8912_v14 }
 0xedb   : > { %7971 = vmatpush1.bf16.msra.mxu0 %v8914_v18 }
 0xedc   : > { %7973 = vmatprep.subr.bf16.mxu0 %v8916_v33 }
 0xedf   : > { %7975 = vmatpush1.bf16.msra.mxu0 %v8918_v36 }
 0xee0   : > { %7977 = vmatprep.subr.bf16.mxu0 %v8920_v43 }
 0xee3   : > { %7979 = vmatpush1.bf16.msra.mxu0 %v8922_v13 }
 0xee4   : > { %7981 = vmatprep.subr.bf16.mxu0 %v8741_v29 }
 0xee6   : > { %3824 = vmatmul.mubr.f32.vlgmr.msra.gmra.mrb[4].mxu0 %v3352_v17 }
 0xee7   : > { %7983 = vmatpush1.bf16.msra.mxu0 %v8747_v30  ;;  %3910 = vmatprep.mubr.f32.mxu0 %v10029_v56 }
 0xee8   : > { %7985 = vmatprep.subr.bf16.mxu0 %v8770_v41 }
 0xeeb   : > { %7987 = vmatpush1.bf16.msra.mxu0 %v8772_v42 }
 0xeec   : > { %7989 = vmatprep.subr.bf16.mxu0 %v8796_v51 }
 0xeef   : > { %7991 = vmatpush1.bf16.msra.mxu0 %v8802_v54 }
 0xef0   : > { %7993 = vmatprep.subr.bf16.mxu0 %v8825_v1 }
 0xef3   : > { %7995 = vmatpush1.bf16.msra.mxu0 %v8835_v6 }
 0xef4   : > { %8093 = vmatprep.subr.bf16.mxu0 %v8741_v29 }
 0xef6   : > { %3912 = vmatmul.mubr.f32.vlgmr.msra.gmra.mrb[4].mxu0 %v3352_v17 }
 0xef7   : > { %8095 = vmatpush1.bf16.msra.mxu0 %v8747_v30  ;;  %4779 = vmatprep.mubr.f32.mxu0 %v10029_v56 }
 0xef8   : > { %8097 = vmatprep.subr.bf16.mxu0 %v8770_v41 }
 0xefb   : > { %8099 = vmatpush1.bf16.msra.mxu0 %v8772_v42 }
 0xefc   : > { %8101 = vmatprep.subr.bf16.mxu0 %v8796_v51 }
 0xeff   : > { %8103 = vmatpush1.bf16.msra.mxu0 %v8802_v54 }
 0xf00   : > { %8105 = vmatprep.subr.bf16.mxu0 %v8825_v1 }
 0xf03   : > { %8107 = vmatpush1.bf16.msra.mxu0 %v8835_v6 }
 0xf04   : > { %8109 = vmatprep.subr.bf16.mxu0 %v8851_v19 }
 0xfc9   : > { %v3913_v9 = vpop.f32.mrb[4].mxu0 }
 0xfca   : > { %v9436_v39 = vsel %vm3944_vm10, %v3913_v9, %v9328_v24  ;;  %v3915_v5 = vpop.f32.mrb[5].mxu0 }
 0xfcb   : > { %v3951_v53 = vadd.f32 %v7243_v59, %v9436_v39  ;;  %v3918_v32 = vadd.f32 %v8997_v46, %v3915_v5 }
 0xfcd   : > { %v3952_v26 = vmul.f32 %v3951_v53, %v8702_v8  ;;  %v3919_v31 = vmul.f32 %v3918_v32, %v8702_v8 }
 0xfcf   : > { %8562 = vtanh.f32 %v3952_v26 }
 0xfd0   : > { %8564 = vtanh.f32 %v3919_v31 }
 0xfd9   : > { %v8563_v22 = vpop.eup %8562 }
 0xfda   : > { %v8565_v47 = vpop.eup %8564  ;;  %v3954_v63 = vmul.f32 %v8563_v22, %v8702_v8 }
 0xfdb   : > { %v3921_v34 = vmul.f32 %v8565_v47, %v8702_v8 }
 0xfdc   : > { %v3955_v24 = vadd.f32 %v3954_v63, %v8705_v11 }
 0xfdd   : > { %v3922_v61 = vadd.f32 %v3921_v34, %v8705_v11 }
 0xfde   : > { %3958 = vrot.lane.b32.xlu1 %v3955_v24, %s8617_s12  ;;  %v3956_v7 = vmul.f32 %v3955_v24, %v9454_v48 }
 0xfdf   : > { %3925 = vrot.lane.b32.xlu0 %v3922_v61, %s8617_s12  ;;  %v3923_v59 = vmul.f32 %v3922_v61, %v9461_v52 }
0x1050   : > { %v3959_v46 = vpop.permute.xlu1 %3958 }
0x1051   : > { %v3961_v55 = vmul.f32 %v3959_v46, %v3955_v24  ;;  %v3926_v23 = vpop.permute.xlu0 %3925 }
0x1052   : > { %v3928_v17 = vmul.f32 %v3926_v23, %v3922_v61  ;;  %v7244_v23 = vld [vmem:[%s8695_s11 + $0xc] sm:$0x3] }
0x1053   : > { %3963 = vrot.lane.b32.xlu1 %v3961_v55, %s8618_s13 }
0x1054   : > { %3930 = vrot.lane.b32.xlu0 %v3928_v17, %s8618_s13 }
0x10c5   : > { %v3964_v21 = vpop.permute.xlu1 %3963 }
0x10c6   : > { %v9464_v9 = vadd.f32 %v3964_v21, %v3956_v7  ;;  %v3931_v5 = vpop.permute.xlu0 %3930 }
0x10c7   : > { %v9466_v53 = vadd.f32 %v3931_v5, %v3923_v59 }
0x10c8   : > { %8566 = vtanh.f32 %v9464_v9 }
0x10c9   : > { %8568 = vtanh.f32 %v9466_v53 }
0x10d2   : > { %v8567_v40 = vpop.eup %8566 }
0x10d3   : > { %v8569_v25 = vpop.eup %8568  ;;  %3969 = vrot.lane.b32.xlu1 %v8567_v40, %s8617_s12 }
0x10d4   : > { %3936 = vrot.lane.b32.xlu0 %v8569_v25, %s8617_s12 }
0x1145   : > { %v3970_v20 = vpop.permute.xlu1 %3969 }
0x1146   : > { %v3972_v44 = vmul.f32 %v3970_v20, %v3955_v24  ;;  %v3937_v3 = vpop.permute.xlu0 %3936 }
0x1147   : > { %v3939_v32 = vmul.f32 %v3937_v3, %v3922_v61 }
0x1148   : > { %3974 = vrot.lane.b32.xlu0 %v3972_v44, %s8618_s13 }
0x1149   : > { %v9476_v26 = vsel %vm3944_vm10, %v3939_v32, %v9368_v27  ;;  %v9537_v27 = vstv %s4656_s8 }
0x114a   : > { %3978 = vrot.lane.b32.xlu1 %v9476_v26, %s8617_s12  ;;  %vm4658_vm11 = vcmp.eq.s32.totalorder %v9537_v27, 1 }
0x11ba   : > { %v3975_v31 = vpop.permute.xlu0 %3974 }
0x11bc   : > { %v3979_v22 = vpop.permute.xlu1 %3978 }
0x11bd   : > { %v3981_v47 = vsel %vm402_vm4, %v3975_v31, %v3979_v22 }
0x11be   : > { %v3983_v63 = vsel %vm404_vm5, %v3981_v47, 0 }
0x11bf   : > { %v4066_v34 = vand.u32 4294901760, %v3983_v63 }
0x11c1   : > { %v4067_v24 = vsub.f32 %v3983_v63, %v4066_v34 }
0x11c3   : > { %v4068_v46 = vand.u32 4294901760, %v4067_v24 }
0x11c5   : > { %v4069_v61 = vsub.f32 %v4067_v24, %v4068_v46 }
0x11c7   : > { %v4070_v55 = vand.u32 4294901760, %v4069_v61  ;;  %v9574_v61 = vsel %vm3944_vm10, %v9466_v53, %v9461_v52 }
0x11c9   : > { %4071 = vmatmul.mubr.f32.vlgmr.msra.gmra.mrb[4].mxu1 %v4070_v55 }
0x11ca   : > { %8015 = vmatpush1.bf16.msra.mxu1 %v8932_v50  ;;  %4221 = vmatprep.mubr.f32.mxu1 %v10029_v56 }
0x11cb   : > { %8017 = vmatprep.subr.bf16.mxu1 %v8869_v45 }
0x11ce   : > { %8019 = vmatpush1.bf16.msra.mxu1 %v8871_v2 }
0x11cf   : > { %8021 = vmatprep.subr.bf16.mxu1 %v8874_v37 }
0x11d2   : > { %8023 = vmatpush1.bf16.msra.mxu1 %v8876_v4 }
0x11d3   : > { %8025 = vmatprep.subr.bf16.mxu1 %v8878_v12 }
0x11d6   : > { %8027 = vmatpush1.bf16.msra.mxu1 %v8880_v62 }
0x11d7   : > { %8029 = vmatprep.subr.bf16.mxu1 %v8884_v28 }
0x11d9   : > { %4223 = vmatmul.mubr.f32.vlgmr.msra.gmra.mrb[4].mxu1 %v4066_v34 }
0x11da   : > { %8031 = vmatpush1.bf16.msra.mxu1 %v8942_v58  ;;  %4325 = vmatprep.mubr.f32.mxu1 %v10029_v56 }
0x11db   : > { %8033 = vmatprep.subr.bf16.mxu1 %v8888_v60 }
0x11de   : > { %8035 = vmatpush1.bf16.msra.mxu1 %v8892_v0 }
0x11df   : > { %8037 = vmatprep.subr.bf16.mxu1 %v8894_v15 }
0x11e2   : > { %8039 = vmatpush1.bf16.msra.mxu1 %v8896_v16 }
0x11e3   : > { %8041 = vmatprep.subr.bf16.mxu1 %v8898_v35 }
0x11e6   : > { %8043 = vmatpush1.bf16.msra.mxu1 %v8900_v49 }
0x11e7   : > { %8045 = vmatprep.subr.bf16.mxu1 %v8741_v29 }
0x11e9   : > { %4328 = vmatmul.mubr.f32.vlgmr.msra.gmra.mrb[4].mxu1 %v4067_v24  ;;  %v9567_v24 = vsel %vm4658_vm11, %v9464_v9, %v9454_v48 }
0x11ea   : > { %8047 = vmatpush1.bf16.msra.mxu1 %v8747_v30  ;;  %4414 = vmatprep.mubr.f32.mxu1 %v10029_v56 }
0x11eb   : > { %8049 = vmatprep.subr.bf16.mxu1 %v8770_v41 }
0x11ee   : > { %8051 = vmatpush1.bf16.msra.mxu1 %v8772_v42 }
0x11ef   : > { %8053 = vmatprep.subr.bf16.mxu1 %v8796_v51 }
0x11f2   : > { %8055 = vmatpush1.bf16.msra.mxu1 %v8802_v54 }
0x11f3   : > { %8057 = vmatprep.subr.bf16.mxu1 %v8825_v1 }
0x11f6   : > { %8059 = vmatpush1.bf16.msra.mxu1 %v8835_v6 }
0x11f7   : > { %8061 = vmatprep.subr.bf16.mxu1 %v8906_v57 }
0x11f9   : > { %4418 = vmatmul.mubr.f32.vlgmr.msra.gmra.mrb[4].mxu1 %v4068_v46 }
0x11fa   : > { %8063 = vmatpush1.bf16.msra.mxu1 %v8962_v10  ;;  %4536 = vmatprep.mubr.f32.mxu1 %v10029_v56 }
0x11fb   : > { %8065 = vmatprep.subr.bf16.mxu1 %v8912_v14 }
0x11fe   : > { %8067 = vmatpush1.bf16.msra.mxu1 %v8914_v18 }
0x11ff   : > { %8069 = vmatprep.subr.bf16.mxu1 %v8916_v33 }
0x1202   : > { %8071 = vmatpush1.bf16.msra.mxu1 %v8918_v36 }
0x1203   : > { %8073 = vmatprep.subr.bf16.mxu1 %v8920_v43 }
0x1206   : > { %8075 = vmatpush1.bf16.msra.mxu1 %v8922_v13 }
0x1207   : > { %8077 = vmatprep.subr.bf16.mxu1 %v8741_v29 }
0x1209   : > { %4538 = vmatmul.mubr.f32.vlgmr.msra.gmra.mrb[4].mxu1 %v4066_v34 }
0x120a   : > { %8079 = vmatpush1.bf16.msra.mxu1 %v8747_v30  ;;  %4624 = vmatprep.mubr.f32.mxu1 %v10029_v56 }
0x120b   : > { %8081 = vmatprep.subr.bf16.mxu1 %v8770_v41 }
0x120e   : > { %8083 = vmatpush1.bf16.msra.mxu1 %v8772_v42 }
0x120f   : > { %8085 = vmatprep.subr.bf16.mxu1 %v8796_v51 }
0x1212   : > { %8087 = vmatpush1.bf16.msra.mxu1 %v8802_v54 }
0x1213   : > { %8089 = vmatprep.subr.bf16.mxu1 %v8825_v1 }
0x1216   : > { %8091 = vmatpush1.bf16.msra.mxu1 %v8835_v6 }
0x1217   : > { %8189 = vmatprep.subr.bf16.mxu1 %v8741_v29 }
0x1219   : > { %4626 = vmatmul.mubr.f32.vlgmr.msra.gmra.mrb[4].mxu1 %v4066_v34 }
0x121a   : > { %8191 = vmatpush1.bf16.msra.mxu1 %v8747_v30  ;;  %5493 = vmatprep.mubr.f32.mxu1 %v10029_v56 }
0x121b   : > { %8193 = vmatprep.subr.bf16.mxu1 %v8770_v41 }
0x121e   : > { %8195 = vmatpush1.bf16.msra.mxu1 %v8772_v42 }
0x121f   : > { %8197 = vmatprep.subr.bf16.mxu1 %v8796_v51 }
0x1222   : > { %8199 = vmatpush1.bf16.msra.mxu1 %v8802_v54 }
0x1223   : > { %8201 = vmatprep.subr.bf16.mxu1 %v8825_v1 }
0x1226   : > { %8203 = vmatpush1.bf16.msra.mxu1 %v8835_v6 }
0x1227   : > { %8205 = vmatprep.subr.bf16.mxu1 %v8851_v19  ;;  %v9550_v19 = vld [vmem:[%s10011_s2] ss:$0 sm:$0xff] }
0x12ec   : > { %v4627_v17 = vpop.f32.mrb[4].mxu1 }
0x12ed   : > { %v9544_v7 = vsel %vm4658_vm11, %v4627_v17, %v9436_v39  ;;  %v4629_v21 = vpop.f32.mrb[5].mxu1 }
0x12ee   : > { %v4665_v59 = vadd.f32 %v7244_v23, %v9544_v7  ;;  %v4632_v5 = vadd.f32 %v9550_v19, %v4629_v21 }
0x12f0   : > { %v4666_v40 = vmul.f32 %v4665_v59, %v8702_v8  ;;  %v4633_v25 = vmul.f32 %v4632_v5, %v8702_v8 }
0x12f2   : > { %8570 = vtanh.f32 %v4666_v40 }
0x12f3   : > { %8572 = vtanh.f32 %v4633_v25 }
0x12fc   : > { %v8571_v20 = vpop.eup %8570 }
0x12fd   : > { %v8573_v44 = vpop.eup %8572  ;;  %v4668_v39 = vmul.f32 %v8571_v20, %v8702_v8 }
0x12fe   : > { %v4635_v3 = vmul.f32 %v8573_v44, %v8702_v8 }
0x12ff   : > { %v4669_v32 = vadd.f32 %v4668_v39, %v8705_v11 }
0x1300   : > { %v4636_v31 = vadd.f32 %v4635_v3, %v8705_v11 }
0x1301   : > { %4672 = vrot.lane.b32.xlu1 %v4669_v32, %s8617_s12  ;;  %v4670_v46 = vmul.f32 %v4669_v32, %v9567_v24 }
0x1302   : > { %4639 = vrot.lane.b32.xlu0 %v4636_v31, %s8617_s12  ;;  %v4637_v23 = vmul.f32 %v4636_v31, %v9574_v61 }
0x1373   : > { %v4673_v22 = vpop.permute.xlu1 %4672 }
0x1374   : > { %v4675_v47 = vmul.f32 %v4673_v22, %v4669_v32  ;;  %v4640_v63 = vpop.permute.xlu0 %4639 }
0x1375   : > { %v4642_v34 = vmul.f32 %v4640_v63, %v4636_v31  ;;  %v7245_v63 = vld [vmem:[%s8695_s11 + $0xe] sm:$0x3]  ;;  %s6082_s11 = sadd.s32 7, %s8688_s29 }
0x1376   : > { %4677 = vrot.lane.b32.xlu1 %v4675_v47, %s8618_s13  ;;  %p6083_p13 = scmp.lt.s32.totalorder %s6082_s11, 12 }
0x1377   : > { %4644 = vrot.lane.b32.xlu0 %v4642_v34, %s8618_s13 }
0x1378   : > { %s6084_s16 = scalar_select %p6083_p13, 1, 0 }
0x13e8   : > { %v4678_v55 = vpop.permute.xlu1 %4677 }
0x13e9   : > { %v9577_v17 = vadd.f32 %v4678_v55, %v4670_v46  ;;  %v4645_v21 = vpop.permute.xlu0 %4644 }
0x13ea   : > { %v9579_v59 = vadd.f32 %v4645_v21, %v4637_v23 }
0x13eb   : > { %8574 = vtanh.f32 %v9577_v17 }
0x13ec   : > { %8576 = vtanh.f32 %v9579_v59 }
0x13f5   : > { %v8575_v48 = vpop.eup %8574 }
0x13f6   : > { %v8577_v9 = vpop.eup %8576  ;;  %4683 = vrot.lane.b32.xlu1 %v8575_v48, %s8617_s12 }
0x13f7   : > { %4650 = vrot.lane.b32.xlu0 %v8577_v9, %s8617_s12 }
0x1468   : > { %v4684_v38 = vpop.permute.xlu1 %4683 }
0x1469   : > { %v4686_v52 = vmul.f32 %v4684_v38, %v4669_v32  ;;  %v4651_v53 = vpop.permute.xlu0 %4650 }
0x146a   : > { %v4653_v5 = vmul.f32 %v4651_v53, %v4636_v31 }
0x146b   : > { %4688 = vrot.lane.b32.xlu0 %v4686_v52, %s8618_s13 }
0x146c   : > { %v9589_v40 = vsel %vm4658_vm11, %v4653_v5, %v9476_v26  ;;  %v9640_v26 = vstv %s5370_s15 }
0x146d   : > { %4692 = vrot.lane.b32.xlu1 %v9589_v40, %s8617_s12  ;;  %vm5372_vm12 = vcmp.eq.s32.totalorder %v9640_v26, 1 }
0x14dd   : > { %v4689_v25 = vpop.permute.xlu0 %4688 }
0x14df   : > { %v4693_v20 = vpop.permute.xlu1 %4692 }
0x14e0   : > { %v4695_v44 = vsel %vm402_vm4, %v4689_v25, %v4693_v20 }
0x14e1   : > { %v4697_v39 = vsel %vm404_vm5, %v4695_v44, 0 }
0x14e2   : > { %v4780_v3 = vand.u32 4294901760, %v4697_v39 }
0x14e4   : > { %v4781_v32 = vsub.f32 %v4697_v39, %v4780_v3 }
0x14e6   : > { %v4782_v22 = vand.u32 4294901760, %v4781_v32 }
0x14e8   : > { %v4783_v31 = vsub.f32 %v4781_v32, %v4782_v22 }
0x14ea   : > { %v4784_v47 = vand.u32 4294901760, %v4783_v31  ;;  %v9672_v31 = vsel %vm4658_vm11, %v9579_v59, %v9574_v61 }
0x14ec   : > { %4785 = vmatmul.mubr.f32.vlgmr.msra.gmra.mrb[6].mxu0 %v4784_v47 }
0x14ed   : > { %8111 = vmatpush1.bf16.msra.mxu0 %v8932_v50  ;;  %4935 = vmatprep.mubr.f32.mxu0 %v10029_v56 }
0x14ee   : > { %8113 = vmatprep.subr.bf16.mxu0 %v8869_v45 }
0x14f1   : > { %8115 = vmatpush1.bf16.msra.mxu0 %v8871_v2 }
0x14f2   : > { %8117 = vmatprep.subr.bf16.mxu0 %v8874_v37 }
0x14f5   : > { %8119 = vmatpush1.bf16.msra.mxu0 %v8876_v4 }
0x14f6   : > { %8121 = vmatprep.subr.bf16.mxu0 %v8878_v12 }
0x14f9   : > { %8123 = vmatpush1.bf16.msra.mxu0 %v8880_v62 }
0x14fa   : > { %8125 = vmatprep.subr.bf16.mxu0 %v8884_v28 }
0x14fc   : > { %4937 = vmatmul.mubr.f32.vlgmr.msra.gmra.mrb[6].mxu0 %v4780_v3 }
0x14fd   : > { %8127 = vmatpush1.bf16.msra.mxu0 %v8942_v58  ;;  %5039 = vmatprep.mubr.f32.mxu0 %v10029_v56 }
0x14fe   : > { %8129 = vmatprep.subr.bf16.mxu0 %v8888_v60 }
0x1501   : > { %8131 = vmatpush1.bf16.msra.mxu0 %v8892_v0 }
0x1502   : > { %8133 = vmatprep.subr.bf16.mxu0 %v8894_v15 }
0x1505   : > { %8135 = vmatpush1.bf16.msra.mxu0 %v8896_v16 }
0x1506   : > { %8137 = vmatprep.subr.bf16.mxu0 %v8898_v35 }
0x1509   : > { %8139 = vmatpush1.bf16.msra.mxu0 %v8900_v49 }
0x150a   : > { %8141 = vmatprep.subr.bf16.mxu0 %v8741_v29 }
0x150c   : > { %5042 = vmatmul.mubr.f32.vlgmr.msra.gmra.mrb[6].mxu0 %v4781_v32  ;;  %v9665_v32 = vsel %vm5372_vm12, %v9577_v17, %v9567_v24 }
0x150d   : > { %8143 = vmatpush1.bf16.msra.mxu0 %v8747_v30  ;;  %5128 = vmatprep.mubr.f32.mxu0 %v10029_v56 }
0x150e   : > { %8145 = vmatprep.subr.bf16.mxu0 %v8770_v41 }
0x1511   : > { %8147 = vmatpush1.bf16.msra.mxu0 %v8772_v42 }
0x1512   : > { %8149 = vmatprep.subr.bf16.mxu0 %v8796_v51 }
0x1515   : > { %8151 = vmatpush1.bf16.msra.mxu0 %v8802_v54 }
0x1516   : > { %8153 = vmatprep.subr.bf16.mxu0 %v8825_v1 }
0x1519   : > { %8155 = vmatpush1.bf16.msra.mxu0 %v8835_v6 }
0x151a   : > { %8157 = vmatprep.subr.bf16.mxu0 %v8906_v57 }
0x151c   : > { %5132 = vmatmul.mubr.f32.vlgmr.msra.gmra.mrb[6].mxu0 %v4782_v22 }
0x151d   : > { %8159 = vmatpush1.bf16.msra.mxu0 %v8962_v10  ;;  %5250 = vmatprep.mubr.f32.mxu0 %v10029_v56 }
0x151e   : > { %8161 = vmatprep.subr.bf16.mxu0 %v8912_v14 }
0x1521   : > { %8163 = vmatpush1.bf16.msra.mxu0 %v8914_v18 }
0x1522   : > { %8165 = vmatprep.subr.bf16.mxu0 %v8916_v33 }
0x1525   : > { %8167 = vmatpush1.bf16.msra.mxu0 %v8918_v36 }
0x1526   : > { %8169 = vmatprep.subr.bf16.mxu0 %v8920_v43 }
0x1529   : > { %8171 = vmatpush1.bf16.msra.mxu0 %v8922_v13 }
0x152a   : > { %8173 = vmatprep.subr.bf16.mxu0 %v8741_v29 }
0x152c   : > { %5252 = vmatmul.mubr.f32.vlgmr.msra.gmra.mrb[6].mxu0 %v4780_v3 }
0x152d   : > { %8175 = vmatpush1.bf16.msra.mxu0 %v8747_v30  ;;  %5338 = vmatprep.mubr.f32.mxu0 %v10029_v56 }
0x152e   : > { %8177 = vmatprep.subr.bf16.mxu0 %v8770_v41 }
0x1531   : > { %8179 = vmatpush1.bf16.msra.mxu0 %v8772_v42 }
0x1532   : > { %8181 = vmatprep.subr.bf16.mxu0 %v8796_v51 }
0x1535   : > { %8183 = vmatpush1.bf16.msra.mxu0 %v8802_v54 }
0x1536   : > { %8185 = vmatprep.subr.bf16.mxu0 %v8825_v1 }
0x1539   : > { %8187 = vmatpush1.bf16.msra.mxu0 %v8835_v6 }
0x153c   : > { %5340 = vmatmul.mubr.f32.vlgmr.msra.gmra.mrb[6].mxu0 %v4780_v3 }
0x160f   : > { %v5341_v34 = vpop.f32.mrb[6].mxu0 }
0x1610   : > { %v9647_v46 = vsel %vm5372_vm12, %v5341_v34, %v9544_v7  ;;  %v5343_v55 = vpop.f32.mrb[7].mxu0 }
0x1611   : > { %v5379_v23 = vadd.f32 %v7245_v63, %v9647_v46  ;;  %v5346_v21 = vadd.f32 %v9550_v19, %v5343_v55 }
0x1613   : > { %v5380_v48 = vmul.f32 %v5379_v23, %v8702_v8  ;;  %v5347_v9 = vmul.f32 %v5346_v21, %v8702_v8 }
0x1615   : > { %8578 = vtanh.f32 %v5380_v48 }
0x1616   : > { %8580 = vtanh.f32 %v5347_v9 }
0x161f   : > { %v8579_v38 = vpop.eup %8578 }
0x1620   : > { %v8581_v52 = vpop.eup %8580  ;;  %v5382_v53 = vmul.f32 %v8579_v38, %v8702_v8 }
0x1621   : > { %v5349_v5 = vmul.f32 %v8581_v52, %v8702_v8 }
0x1622   : > { %v5383_v7 = vadd.f32 %v5382_v53, %v8705_v11 }
0x1623   : > { %v5350_v25 = vadd.f32 %v5349_v5, %v8705_v11 }
0x1624   : > { %5386 = vrot.lane.b32.xlu1 %v5383_v7, %s8617_s12  ;;  %v5384_v22 = vmul.f32 %v5383_v7, %v9665_v32 }
0x1625   : > { %5353 = vrot.lane.b32.xlu0 %v5350_v25, %s8617_s12  ;;  %v5351_v63 = vmul.f32 %v5350_v25, %v9672_v31 }
0x1696   : > { %v5387_v20 = vpop.permute.xlu1 %5386 }
0x1697   : > { %v5389_v44 = vmul.f32 %v5387_v20, %v5383_v7  ;;  %v5354_v39 = vpop.permute.xlu0 %5353 }
0x1698   : > { %v5356_v3 = vmul.f32 %v5354_v39, %v5350_v25 }
0x1699   : > { %5391 = vrot.lane.b32.xlu1 %v5389_v44, %s8618_s13 }
0x169a   : > { %5358 = vrot.lane.b32.xlu0 %v5356_v3, %s8618_s13 }
0x170b   : > { %v5392_v47 = vpop.permute.xlu1 %5391 }
0x170c   : > { %v9675_v34 = vadd.f32 %v5392_v47, %v5384_v22  ;;  %v5359_v55 = vpop.permute.xlu0 %5358 }
0x170d   : > { %v9677_v23 = vadd.f32 %v5359_v55, %v5351_v63 }
0x170e   : > { %8582 = vtanh.f32 %v9675_v34 }
0x170f   : > { %8584 = vtanh.f32 %v9677_v23 }
0x1718   : > { %v8583_v24 = vpop.eup %8582 }
0x1719   : > { %v8585_v17 = vpop.eup %8584  ;;  %5397 = vrot.lane.b32.xlu1 %v8583_v24, %s8617_s12 }
0x171a   : > { %5364 = vrot.lane.b32.xlu0 %v8585_v17, %s8617_s12 }
0x178b   : > { %v5398_v27 = vpop.permute.xlu1 %5397 }
0x178c   : > { %v5400_v61 = vmul.f32 %v5398_v27, %v5383_v7  ;;  %v5365_v59 = vpop.permute.xlu0 %5364 }
0x178d   : > { %v5367_v21 = vmul.f32 %v5365_v59, %v5350_v25 }
0x178e   : > { %5402 = vrot.lane.b32.xlu0 %v5400_v61, %s8618_s13 }
0x178f   : > { %v9687_v48 = vsel %vm5372_vm12, %v5367_v21, %v9589_v40 }
0x1790   : > { %5406 = vrot.lane.b32.xlu1 %v9687_v48, %s8617_s12 }
0x1800   : > { %v5403_v9 = vpop.permute.xlu0 %5402 }
0x1802   : > { %v5407_v38 = vpop.permute.xlu1 %5406 }
0x1803   : > { %v5409_v52 = vsel %vm402_vm4, %v5403_v9, %v5407_v38  ;;  %v9833_v38 = vld [vmem:[%s10014_s5 + $0x10] sm:$0xff] (!%p7246_p0) }
0x1804   : > { %v5411_v53 = vsel %vm404_vm5, %v5409_v52, 0 }
0x1805   : > { %v5494_v5 = vand.u32 4294901760, %v5411_v53 }
0x1807   : > { %v5495_v7 = vsub.f32 %v5411_v53, %v5494_v5 }
0x1809   : > { %v5496_v20 = vand.u32 4294901760, %v5495_v7 }
0x180b   : > { %v5497_v25 = vsub.f32 %v5495_v7, %v5496_v20 }
0x180d   : > { %v5498_v44 = vand.u32 4294901760, %v5497_v25 }
0x180f   : > { %5499 = vmatmul.mubr.f32.vlgmr.msra.gmra.mrb[6].mxu1 %v5498_v44 }
0x1810   : > { %8207 = vmatpush1.bf16.msra.mxu1 %v8932_v50  ;;  %5649 = vmatprep.mubr.f32.mxu1 %v10029_v56  ;;  %v6115_v50 = vld [vmem:[%s10012_s3 + $0x18] sm:$0xff] (!%p7246_p0) }
0x1811   : > { %8209 = vmatprep.subr.bf16.mxu1 %v8869_v45  ;;  %v6135_v40 = vand.u32 (!%p7246_p0), 4294901760, %v6115_v50 }
0x1813   : > { %v9803_v63 = vsub.f32 (!%p7246_p0), %v6115_v50, %v6135_v40 }
0x1814   : > { %8211 = vmatpush1.bf16.msra.mxu1 %v8871_v2 }
0x1815   : > { %8213 = vmatprep.subr.bf16.mxu1 %v8874_v37  ;;  %v5376_v37 = vsel %vm5372_vm12, %v9677_v23, %v9672_v31  ;;  %v6228_v61 = vand.u32 (!%p7246_p0), 4294901760, %v9803_v63 }
0x1817   : > { %v6229_v53 = vsub.f32 (!%p7246_p0), %v9803_v63, %v6228_v61 }
0x1818   : > { %8215 = vmatpush1.bf16.msra.mxu1 %v8876_v4 }
0x1819   : > { %8217 = vmatprep.subr.bf16.mxu1 %v8878_v12 }
0x181c   : > { %8219 = vmatpush1.bf16.msra.mxu1 %v8880_v62 }
0x181d   : > { %8221 = vmatprep.subr.bf16.mxu1 %v8884_v28 }
0x181f   : > { %5651 = vmatmul.mubr.f32.vlgmr.msra.gmra.mrb[6].mxu1 %v5494_v5 }
0x1820   : > { %8223 = vmatpush1.bf16.msra.mxu1 %v8942_v58  ;;  %5753 = vmatprep.mubr.f32.mxu1 %v10029_v56  ;;  %v8623_v58 = vmov (!%p7246_p0), 0.0  }
0x1821   : > { %8225 = vmatprep.subr.bf16.mxu1 %v8888_v60  ;;  %7344 = vmatprep.mubr.msk.f32.mxu0 (!%p7246_p0), %vm8622_vm15, %v8623_v58 }
0x1824   : > { %8227 = vmatpush1.bf16.msra.mxu1 %v8892_v0 }
0x1825   : > { %8229 = vmatprep.subr.bf16.mxu1 %v8894_v15 }
0x1828   : > { %8231 = vmatpush1.bf16.msra.mxu1 %v8896_v16 }
0x1829   : > { %8233 = vmatprep.subr.bf16.mxu1 %v8898_v35 }
0x182c   : > { %8235 = vmatpush1.bf16.msra.mxu1 %v8900_v49 }
0x182d   : > { %8237 = vmatprep.subr.bf16.mxu1 %v8741_v29 }
0x182f   : > { %5756 = vmatmul.mubr.f32.vlgmr.msra.gmra.mrb[6].mxu1 %v5495_v7  ;;  %v9843_v7 = vld [vmem:[%s10014_s5 + $0x18] sm:$0xff] (!%p7246_p0) }
0x1830   : > { %8239 = vmatpush1.bf16.msra.mxu1 %v8747_v30  ;;  %5842 = vmatprep.mubr.f32.mxu1 %v10029_v56 }
0x1831   : > { %8241 = vmatprep.subr.bf16.mxu1 %v8770_v41 }
0x1834   : > { %8243 = vmatpush1.bf16.msra.mxu1 %v8772_v42 }
0x1835   : > { %8245 = vmatprep.subr.bf16.mxu1 %v8796_v51 }
0x1838   : > { %8247 = vmatpush1.bf16.msra.mxu1 %v8802_v54 }
0x1839   : > { %8249 = vmatprep.subr.bf16.mxu1 %v8825_v1 }
0x183c   : > { %8251 = vmatpush1.bf16.msra.mxu1 %v8835_v6 }
0x183d   : > { %8253 = vmatprep.subr.bf16.mxu1 %v8906_v57 }
0x183f   : > { %5846 = vmatmul.mubr.f32.vlgmr.msra.gmra.mrb[6].mxu1 %v5496_v20 }
0x1840   : > { %8255 = vmatpush1.bf16.msra.mxu1 %v8962_v10  ;;  %5964 = vmatprep.mubr.f32.mxu1 %v10029_v56 }
0x1841   : > { %8257 = vmatprep.subr.bf16.mxu1 %v8912_v14  ;;  %v6112_v14 = vld [vmem:[%s10012_s3] sm:$0xff] (!%p7246_p0) }
0x1844   : > { %8259 = vmatpush1.bf16.msra.mxu1 %v8914_v18  ;;  %v6113_v18 = vld [vmem:[%s10012_s3 + $0x8] sm:$0xff] (!%p7246_p0) }
0x1845   : > { %8261 = vmatprep.subr.bf16.mxu1 %v8916_v33  ;;  %v6114_v33 = vld [vmem:[%s10012_s3 + $0x10] sm:$0xff] (!%p7246_p0) }
0x1848   : > { %8263 = vmatpush1.bf16.msra.mxu1 %v8918_v36  ;;  %v8621_v36 = vmov (!%p7246_p0), 0.0|0.0  }
0x1849   : > { %8265 = vmatprep.subr.bf16.mxu1 %v8920_v43  ;;  %8284 = vmatprep.subr.bf16.mxu0 (!%p7246_p0), %v8621_v36  ;;  %v6126_v43 = vand.u32 (!%p7246_p0), 4294901760, %v6112_v14 }
0x184c   : > { %8267 = vmatpush1.bf16.msra.mxu1 %v8922_v13  ;;  %v6129_v13 = vand.u32 (!%p7246_p0), 4294901760, %v6113_v18 }
0x184d   : > { %8269 = vmatprep.subr.bf16.mxu1 %v8741_v29  ;;  %v6085_v29 = vstv %s6084_s16 }
0x184e   : > { %vm6086_vm13 = vcmp.eq.s32.totalorder %v6085_v29, 1  ;;  %v9793_v3 = vpack.c.bf16 (!%p7246_p0), %v6129_v13, %v6126_v43  ;;  %v9797_v22 = vsub.f32 (!%p7246_p0), %v6113_v18, %v6129_v13 }
0x184f   : > { %5966 = vmatmul.mubr.f32.vlgmr.msra.gmra.mrb[6].mxu1 %v5494_v5 }
0x1850   : > { %8271 = vmatpush1.bf16.msra.mxu1 %v8747_v30  ;;  %6052 = vmatprep.mubr.f32.mxu1 %v10029_v56  ;;  %v6132_v56 = vand.u32 (!%p7246_p0), 4294901760, %v6114_v33  ;;  %v6214_v23 = vand.u32 (!%p7246_p0), 4294901760, %v9797_v22 }
0x1851   : > { %8273 = vmatprep.subr.bf16.mxu1 %v8770_v41  ;;  %8286 = vmatpush3.bf16.msra.mxu0 (!%p7246_p0), %v9793_v3 }
0x1852   : > { %v9799_v31 = vsub.f32 (!%p7246_p0), %v6114_v33, %v6132_v56  ;;  %v9801_v47 = vpack.c.bf16 (!%p7246_p0), %v6135_v40, %v6132_v56  ;;  %8287 = vmatprep.subr.bf16.mxu0 (!%p7246_p0), %v8621_v36  ;;  %v6615_v33 = vld [vmem:[%s10014_s5 + $0x20] sm:$0xff] (!%p7246_p0)  ;;  %v6617_v40 = vld [vmem:[%s10014_s5 + $0x30] sm:$0xff] (!%p7246_p0) }
0x1853   : > { %v6642_v13 = vand.u32 (!%p7246_p0), 4294901760, %v6615_v33 }
0x1854   : > { %8275 = vmatpush1.bf16.msra.mxu1 %v8772_v42  ;;  %v6221_v24 = vand.u32 (!%p7246_p0), 4294901760, %v9799_v31 }
0x1855   : > { %8277 = vmatprep.subr.bf16.mxu1 %v8796_v51  ;;  %8289 = vmatpush3.bf16.msra.mxu0 (!%p7246_p0), %v9801_v47  ;;  %v6742_v56 = vsub.f32 (!%p7246_p0), %v6615_v33, %v6642_v13 }
0x1856   : > { %v6222_v9 = vsub.f32 (!%p7246_p0), %v9799_v31, %v6221_v24  ;;  %8290 = vmatprep.subr.bf16.mxu0 (!%p7246_p0), %v8621_v36  ;;  %v8312_v18 = vpack.c.bf16 (!%p7246_p0), %v6228_v61, %v6221_v24 }
0x1858   : > { %8279 = vmatpush1.bf16.msra.mxu1 %v8802_v54  ;;  %v6223_v44 = vand.u32 (!%p7246_p0), 4294901760, %v6222_v9 }
0x1859   : > { %8281 = vmatprep.subr.bf16.mxu1 %v8825_v1 }
0x185c   : > { %8283 = vmatpush1.bf16.msra.mxu1 %v8835_v6 }
0x185d   : > { %8332 = vmatprep.subr.bf16.mxu1 (!%p7246_p0), %v8621_v36 }
0x185f   : > { %6054 = vmatmul.mubr.f32.vlgmr.msra.gmra.mrb[6].mxu1 %v5494_v5 }
0x1860   : > { %7437 = vmatprep.mubr.msk.f32.mxu1 (!%p7246_p0), %vm8622_vm15, %v8623_v58 }
0x1932   : > { %v6055_v30 = vpop.f32.mrb[6].mxu1 }
0x1933   : > { %v6087_v41 = vsel %vm6086_vm13, %v6055_v30, %v9647_v46  ;;  %v6057_v62 = vpop.f32.mrb[7].mxu1  ;;  %v9788_v46 = vld [vmem:[%s10014_s5 + $0x8] sm:$0xff] (!%p7246_p0) }
0x1934   : > { %6091 = vst [vmem:[#allocation2] sm:$0x3] %v6087_v41  ;;  %v6060_v42 = vadd.f32 %v9550_v19, %v6057_v62  ;;  %v9780_v19 = vld [vmem:[%s10014_s5] sm:$0xff] (!%p7246_p0)  ;;  %v6633_v17 = vand.u32 (!%p7246_p0), 4294901760, %v9788_v46  ;;  %v6230_v41 = vand.u32 (!%p7246_p0), 4294901760, %v6229_v53 }
0x1935   : > { %v6630_v39 = vand.u32 (!%p7246_p0), 4294901760, %v9780_v19 }
0x1936   : > { %v6061_v51 = vmul.f32 %v6060_v42, %v8702_v8  ;;  %v9849_v29 = vsub.f32 (!%p7246_p0), %v9788_v46, %v6633_v17  ;;  %v6636_v42 = vand.u32 (!%p7246_p0), 4294901760, %v9833_v38 }
0x1937   : > { %v9819_v59 = vsub.f32 (!%p7246_p0), %v9780_v19, %v6630_v39 }
0x1938   : > { %8586 = vtanh.f32 %v6061_v51 }
0x1939   : > { %v6715_v5 = vand.u32 (!%p7246_p0), 4294901760, %v9819_v59 }
0x193b   : > { %v6716_v62 = vsub.f32 (!%p7246_p0), %v9819_v59, %v6715_v5 }
0x1942   : > { %v8587_v54 = vpop.eup %8586 }
0x1943   : > { %v6063_v1 = vmul.f32 %v8587_v54, %v8702_v8  ;;  %v6089_v8 = vsel %vm6086_vm13, %v9675_v34, %v9665_v32  ;;  %v9795_v32 = vsub.f32 (!%p7246_p0), %v6112_v14, %v6126_v43  ;;  %v6722_v54 = vand.u32 (!%p7246_p0), 4294901760, %v9849_v29  ;;  %v6616_v43 = vld [vmem:[%s10014_s5 + $0x28] sm:$0xff] (!%p7246_p0) }
0x1944   : > { %v6645_v50 = vand.u32 (!%p7246_p0), 4294901760, %v6616_v43 }
0x1945   : > { %v6064_v2 = vadd.f32 %v6063_v1, %v8705_v11  ;;  %v6207_v55 = vand.u32 (!%p7246_p0), 4294901760, %v9795_v32  ;;  %v6639_v1 = vand.u32 (!%p7246_p0), 4294901760, %v9843_v7 }
0x1946   : > { %v8327_v19 = vpack.c.bf16 (!%p7246_p0), %v6645_v50, %v6642_v13 }
0x1947   : > { %6067 = vrot.lane.b32.xlu0 %v6064_v2, %s8617_s12  ;;  %v6065_v4 = vmul.f32 %v6064_v2, %v5376_v37  ;;  %v6208_v21 = vsub.f32 (!%p7246_p0), %v9795_v32, %v6207_v55  ;;  %v8309_v14 = vpack.c.bf16 (!%p7246_p0), %v6214_v23, %v6207_v55 }
0x1949   : > { %v6209_v20 = vand.u32 (!%p7246_p0), 4294901760, %v6208_v21 }
0x19b9   : > { %v6068_v6 = vpop.permute.xlu0 %6067 }
0x19ba   : > { %v6070_v45 = vmul.f32 %v6068_v6, %v6064_v2  ;;  %v8294_v6 = vpack.c.bf16 (!%p7246_p0), %v6230_v41, %v6223_v44  ;;  %v9948_v44 = vpack.c.bf16 (!%p7246_p0), %v6639_v1, %v6636_v42 }
0x19bc   : > { %6072 = vrot.lane.b32.xlu1 %v6070_v45, %s8618_s13  ;;  %v6717_v45 = vand.u32 (!%p7246_p0), 4294901760, %v6716_v62 }
0x1a2e   : > { %v6073_v12 = vpop.permute.xlu1 %6072 }
0x1a2f   : > { %v6075_v28 = vadd.f32 %v6073_v12, %v6065_v4  ;;  %v9871_v4 = vsub.f32 (!%p7246_p0), %v9843_v7, %v6639_v1  ;;  %v7247_v7 = vld [vmem:[%s10013_s4] ss:$0 sm:$0xff] (!%p7246_p0) }
0x1a31   : > { %8588 = vtanh.f32 %v6075_v28  ;;  %v6090_v35 = vsel %vm6086_vm13, %v6075_v28, %v5376_v37  ;;  %v6723_v37 = vsub.f32 (!%p7246_p0), %v9849_v29, %v6722_v54 }
0x1a33   : > { %v6724_v28 = vand.u32 (!%p7246_p0), 4294901760, %v6723_v37 }
0x1a3b   : > { %v8589_v60 = vpop.eup %8588 }
0x1a3c   : > { %6078 = vrot.lane.b32.xlu0 %v8589_v60, %s8617_s12  ;;  %v6736_v60 = vand.u32 (!%p7246_p0), 4294901760, %v9871_v4 }
0x1a40   : > { %6099 = vrot.lane.b32.xlu0 %v6089_v8, %s8620_s17 }
0x1aae   : > { %v6079_v11 = vpop.permute.xlu0 %6078 }
0x1aaf   : > { %v6081_v0 = vmul.f32 %v6079_v11, %v6064_v2  ;;  %v9861_v2 = vsub.f32 (!%p7246_p0), %v9833_v38, %v6636_v42  ;;  %v8297_v11 = vpack.c.bf16 (!%p7246_p0), %v9797_v22, %v9795_v32 }
0x1ab1   : > { %v6088_v15 = vsel %vm6086_vm13, %v6081_v0, %v9687_v48  ;;  %v6215_v48 = vsub.f32 (!%p7246_p0), %v9797_v22, %v6214_v23  ;;  %v6729_v12 = vand.u32 (!%p7246_p0), 4294901760, %v9861_v2  ;;  %v8333_v0 = vpack.c.bf16 (!%p7246_p0), %v6724_v28, %v6717_v45 }
0x1ab2   : > { %6093 = vrot.lane.b32.xlu1 %v6088_v15, %s8618_s13  ;;  %v6100_v16 = vpop.permute.xlu0 %6099  ;;  %v6737_v15 = vsub.f32 (!%p7246_p0), %v9871_v4, %v6736_v60  ;;  %v6648_v22 = vand.u32 (!%p7246_p0), 4294901760, %v6617_v40  ;;  %v8348_v28 = vpack.c.bf16 (!%p7246_p0), %v9871_v4, %v9861_v2 }
0x1ab3   : > { %6102 = vst.msk [vmem:[#allocation4] sm:$0x3] %vm6096_vm14, %v6100_v16  ;;  %v6216_v25 = vand.u32 (!%p7246_p0), 4294901760, %v6215_v48  ;;  %v6730_v8 = vsub.f32 (!%p7246_p0), %v9861_v2, %v6729_v12  ;;  %8334 = vmatpush3.bf16.msra.mxu1 (!%p7246_p0), %v8333_v0 }
0x1ab4   : > { %8335 = vmatprep.subr.bf16.mxu1 (!%p7246_p0), %v8621_v36 }
0x1ab5   : > { %v8291_v51 = vpack.c.bf16 (!%p7246_p0), %v6216_v25, %v6209_v20  ;;  %v6731_v16 = vand.u32 (!%p7246_p0), 4294901760, %v6730_v8 }
0x1ab6   : > { %6104 = vrot.lane.b32.xlu1 %v6090_v35, %s8620_s17  ;;  %v6738_v35 = vand.u32 (!%p7246_p0), 4294901760, %v6737_v15  ;;  %v8369_v15 = vpack.c.bf16 (!%p7246_p0), %v6722_v54, %v6715_v5 }
0x1b23   : > { %6111 = sbr.rel (%p7246_p0) target bundleno = 7498 (0x1d4a), region = 56 }
0x1b24   : > { %v6094_v49 = vpop.permute.xlu1 %6093 }
0x1b25   : > { %6097 = vst.msk [vmem:[#allocation3] sm:$0x3] %vm6096_vm14, %v6094_v49  ;;  %v6123_v10 = vsel (!%p7246_p0), %vm402_vm4, %v6094_v49, 0  ;;  %v8300_v49 = vpack.c.bf16 (!%p7246_p0), %v9803_v63, %v9799_v31 }
0x1b26   : > { %v9782_v26 = vand.u32 (!%p7246_p0), 4294901760, %v6123_v10 }
0x1b28   : > { %v6105_v57 = vpop.permute.xlu1 %6104  ;;  %v9806_v34 = vsub.f32 (!%p7246_p0), %v6123_v10, %v9782_v26  ;;  %v6749_v10 = vsub.f32 (!%p7246_p0), %v6616_v43, %v6645_v50 }
0x1b29   : > { %6107 = vst.msk [vmem:[#allocation5] sm:$0x3] %vm6096_vm14, %v6105_v57  ;;  %v8336_v57 = vpack.c.bf16 (!%p7246_p0), %v6738_v35, %v6731_v16  ;;  %v8372_v16 = vpack.c.bf16 (!%p7246_p0), %v6736_v60, %v6729_v12 }
0x1b2a   : > { %v6196_v27 = vand.u32 4294901760, %v9806_v34  ;;  %v6750_v32 = vand.u32 4294901760, %v6749_v10 }
0x1b2b   : > { %8337 = vmatpush3.bf16.msra.mxu1 %v8336_v57 }
0x1b2c   : > { %v6197_v52 = vsub.f32 %v9806_v34, %v6196_v27  ;;  %8338 = vmatprep.subr.bf16.mxu1 %v8621_v36  ;;  %v6751_v63 = vsub.f32 %v6749_v10, %v6750_v32 }
0x1b2e   : > { %v6198_v30 = vand.u32 4294901760, %v6197_v52  ;;  %v6752_v24 = vand.u32 4294901760, %v6751_v63  ;;  %v9939_v52 = vpack.c.bf16 %v6633_v17, %v6630_v39  ;;  %v8351_v39 = vpack.c.bf16 %v6749_v10, %v6742_v56 }
0x1b30   : > { %7345 = vmatmul.mubr.f32.vlgmr.msra.gmra.mrb[0].mxu0 %v6198_v30 }
0x1b31   : > { %8292 = vmatpush3.bf16.msra.mxu0 %v8291_v51  ;;  %7355 = vmatprep.mubr.msk.f32.mxu0 %vm8622_vm15, %v8623_v58 }
0x1b32   : > { %8293 = vmatprep.subr.bf16.mxu0 %v8621_v36 }
0x1b35   : > { %8295 = vmatpush3.bf16.msra.mxu0 %v8294_v6  ;;  %v8345_v6 = vpack.c.bf16 %v9849_v29, %v9819_v59  ;;  %v7248_v29 = vld [vmem:[#allocation6] ss:$0 sm:$0xff] }
0x1b36   : > { %8296 = vmatprep.subr.bf16.mxu0 %v8621_v36 }
0x1b38   : > { %7356 = vmatmul.mubr.f32.vlgmr.msra.gmra.mrb[0].mxu0 %v9782_v26 }
0x1b39   : > { %8298 = vmatpush3.bf16.msra.mxu0 %v8297_v11  ;;  %7366 = vmatprep.mubr.msk.f32.mxu0 %vm8622_vm15, %v8623_v58 }
0x1b3a   : > { %8299 = vmatprep.subr.bf16.mxu0 %v8621_v36 }
0x1b3d   : > { %8301 = vmatpush3.bf16.msra.mxu0 %v8300_v49 }
0x1b3e   : > { %8302 = vmatprep.subr.bf16.mxu0 %v8621_v36 }
0x1b40   : > { %7367 = vmatmul.mubr.f32.vlgmr.msra.gmra.mrb[0].mxu0 %v9806_v34  ;;  %v6756_v34 = vsub.f32 %v6617_v40, %v6648_v22 }
0x1b41   : > { %8304 = vmatpush3.bf16.msra.mxu0 %v9793_v3  ;;  %7377 = vmatprep.mubr.msk.f32.mxu0 %vm8622_vm15, %v8623_v58 }
0x1b42   : > { %8305 = vmatprep.subr.bf16.mxu0 %v8621_v36 }
0x1b45   : > { %8307 = vmatpush3.bf16.msra.mxu0 %v9801_v47 }
0x1b46   : > { %8308 = vmatprep.subr.bf16.mxu0 %v8621_v36 }
0x1b48   : > { %7378 = vmatmul.mubr.f32.vlgmr.msra.gmra.mrb[0].mxu0 %v6196_v27  ;;  %v6757_v27 = vand.u32 4294901760, %v6756_v34 }
0x1b49   : > { %8310 = vmatpush3.bf16.msra.mxu0 %v8309_v14  ;;  %7388 = vmatprep.mubr.msk.f32.mxu0 %vm8622_vm15, %v8623_v58 }
0x1b4a   : > { %8311 = vmatprep.subr.bf16.mxu0 %v8621_v36  ;;  %v6758_v48 = vsub.f32 %v6756_v34, %v6757_v27 }
0x1b4c   : > { %v6759_v53 = vand.u32 4294901760, %v6758_v48 }
0x1b4d   : > { %8313 = vmatpush3.bf16.msra.mxu0 %v8312_v18 }
0x1b4e   : > { %8314 = vmatprep.subr.bf16.mxu0 %v8621_v36 }
0x1b50   : > { %7389 = vmatmul.mubr.f32.vlgmr.msra.gmra.mrb[0].mxu0 %v9782_v26 }
0x1b51   : > { %8316 = vmatpush3.bf16.msra.mxu0 %v9793_v3  ;;  %7399 = vmatprep.mubr.msk.f32.mxu0 %vm8622_vm15, %v8623_v58  ;;  %v6743_v3 = vand.u32 4294901760, %v6742_v56 }
0x1b52   : > { %8317 = vmatprep.subr.bf16.mxu0 %v8621_v36 }
0x1b53   : > { %v8375_v38 = vpack.c.bf16 %v6750_v32, %v6743_v3 }
0x1b55   : > { %8319 = vmatpush3.bf16.msra.mxu0 %v9801_v47  ;;  %v6744_v47 = vsub.f32 %v6742_v56, %v6743_v3 }
0x1b56   : > { %8320 = vmatprep.subr.bf16.mxu0 %v8621_v36 }
0x1b57   : > { %v6745_v23 = vand.u32 4294901760, %v6744_v47 }
0x1b58   : > { %7400 = vmatmul.mubr.f32.vlgmr.msra.gmra.mrb[0].mxu0 %v9782_v26  ;;  %v6618_v26 = vld [vmem:[%s10014_s5 + $0x38] sm:$0xff] }
0x1b59   : > { %7418 = vmatprep.mubr.msk.f32.mxu0 %vm8622_vm15, %v8623_v58  ;;  %v6651_v31 = vand.u32 4294901760, %v6618_v26  ;;  %v8339_v21 = vpack.c.bf16 %v6752_v24, %v6745_v23  ;;  %8322 = vmatpush3.bf16.msra.mxu0 %v9939_v52 }
0x1b5a   : > { %8323 = vmatprep.subr.bf16.mxu0 %v8621_v36 }
0x1b5b   : > { %v6763_v55 = vsub.f32 %v6618_v26, %v6651_v31  ;;  %8340 = vmatpush3.bf16.msra.mxu1 %v8339_v21  ;;  %v8330_v46 = vpack.c.bf16 %v6651_v31, %v6648_v22 }
0x1b5c   : > { %8341 = vmatprep.subr.bf16.mxu1 %v8621_v36 }
0x1b5d   : > { %v6764_v61 = vand.u32 4294901760, %v6763_v55  ;;  %8325 = vmatpush3.bf16.msra.mxu0 %v9948_v44  ;;  %v8354_v17 = vpack.c.bf16 %v6763_v55, %v6756_v34 }
0x1b5e   : > { %8326 = vmatprep.subr.bf16.mxu0 %v8621_v36 }
0x1b5f   : > { %v6765_v9 = vsub.f32 %v6763_v55, %v6764_v61  ;;  %v8378_v30 = vpack.c.bf16 %v6764_v61, %v6757_v27 }
0x1b61   : > { %v6766_v20 = vand.u32 4294901760, %v6765_v9  ;;  %8328 = vmatpush3.bf16.msra.mxu0 %v8327_v19 }
0x1b62   : > { %8329 = vmatprep.subr.bf16.mxu0 %v8621_v36 }
0x1b63   : > { %v8342_v25 = vpack.c.bf16 %v6766_v20, %v6759_v53 }
0x1b65   : > { %8343 = vmatpush3.bf16.msra.mxu1 %v8342_v25  ;;  %8331 = vmatpush3.bf16.msra.mxu0 %v8330_v46 }
0x1b66   : > { %8344 = vmatprep.subr.bf16.mxu1 %v8621_v36 }
0x1c2b   : > { %v6606_v41 = vpop.f32.mrb[0].mxu0 }
0x1c2c   : > { %v8472_v62 = vadd.f32 %v7247_v7, %v6606_v41  ;;  %v7401_v42 = vpop.f32.mrb[1].mxu0 }
0x1c2e   : > { %v6610_v51 = vmax.f32 %v8472_v62, 0.0 }
0x1c30   : > { %v6627_v1 = vsel %vm404_vm5, %v6610_v51, 0 }
0x1c31   : > { %v6702_v45 = vand.u32 4294901760, %v6627_v1 }
0x1c33   : > { %v6703_v37 = vsub.f32 %v6627_v1, %v6702_v45  ;;  %7438 = vmatmul.mubr.f32.vlgmr.msra.gmra.mrb[0].mxu1 %v6702_v45 }
0x1c34   : > { %8346 = vmatpush3.bf16.msra.mxu1 %v8345_v6  ;;  %7456 = vmatprep.mubr.msk.f32.mxu1 %vm8622_vm15, %v8623_v58 }
0x1c35   : > { %v6704_v8 = vand.u32 4294901760, %v6703_v37  ;;  %8347 = vmatprep.subr.bf16.mxu1 %v8621_v36 }
0x1c37   : > { %v6705_v11 = vsub.f32 %v6703_v37, %v6704_v8 }
0x1c38   : > { %8349 = vmatpush3.bf16.msra.mxu1 %v8348_v28 }
0x1c39   : > { %8350 = vmatprep.subr.bf16.mxu1 %v8621_v36  ;;  %v6706_v0 = vand.u32 4294901760, %v6705_v11 }
0x1c3b   : > { %7419 = vmatmul.mubr.f32.vlgmr.msra.gmra.mrb[2].mxu0 %v6706_v0 }
0x1c3c   : > { %8352 = vmatpush3.bf16.msra.mxu1 %v8351_v39 }
0x1c3d   : > { %8353 = vmatprep.subr.bf16.mxu1 %v8621_v36 }
0x1c40   : > { %8355 = vmatpush3.bf16.msra.mxu1 %v8354_v17 }
0x1c41   : > { %8356 = vmatprep.subr.bf16.mxu1 %v8621_v36 }
0x1c43   : > { %7457 = vmatmul.mubr.f32.vlgmr.msra.gmra.mrb[0].mxu1 %v6703_v37 }
0x1c44   : > { %8358 = vmatpush3.bf16.msra.mxu1 %v9939_v52  ;;  %7475 = vmatprep.mubr.msk.f32.mxu1 %vm8622_vm15, %v8623_v58 }
0x1c45   : > { %8359 = vmatprep.subr.bf16.mxu1 %v8621_v36 }
0x1c48   : > { %8361 = vmatpush3.bf16.msra.mxu1 %v9948_v44 }
0x1c49   : > { %8362 = vmatprep.subr.bf16.mxu1 %v8621_v36 }
0x1c4c   : > { %8364 = vmatpush3.bf16.msra.mxu1 %v8327_v19 }
0x1c4d   : > { %8365 = vmatprep.subr.bf16.mxu1 %v8621_v36 }
0x1c50   : > { %8367 = vmatpush3.bf16.msra.mxu1 %v8330_v46 }
0x1c51   : > { %8368 = vmatprep.subr.bf16.mxu1 %v8621_v36 }
0x1c53   : > { %7476 = vmatmul.mubr.f32.vlgmr.msra.gmra.mrb[0].mxu1 %v6704_v8 }
0x1c54   : > { %8370 = vmatpush3.bf16.msra.mxu1 %v8369_v15  ;;  %7494 = vmatprep.mubr.msk.f32.mxu1 %vm8622_vm15, %v8623_v58 }
0x1c55   : > { %8371 = vmatprep.subr.bf16.mxu1 %v8621_v36 }
0x1c58   : > { %8373 = vmatpush3.bf16.msra.mxu1 %v8372_v16 }
0x1c59   : > { %8374 = vmatprep.subr.bf16.mxu1 %v8621_v36 }
0x1c5c   : > { %8376 = vmatpush3.bf16.msra.mxu1 %v8375_v38 }
0x1c5d   : > { %8377 = vmatprep.subr.bf16.mxu1 %v8621_v36 }
0x1c60   : > { %8379 = vmatpush3.bf16.msra.mxu1 %v8378_v30 }
0x1c61   : > { %8380 = vmatprep.subr.bf16.mxu1 %v8621_v36 }
0x1c63   : > { %7495 = vmatmul.mubr.f32.vlgmr.msra.gmra.mrb[0].mxu1 %v6702_v45 }
0x1c64   : > { %8382 = vmatpush3.bf16.msra.mxu1 %v9939_v52  ;;  %7513 = vmatprep.mubr.msk.f32.mxu1 %vm8622_vm15, %v8623_v58 }
0x1c65   : > { %8383 = vmatprep.subr.bf16.mxu1 %v8621_v36 }
0x1c68   : > { %8385 = vmatpush3.bf16.msra.mxu1 %v9948_v44 }
0x1c69   : > { %8386 = vmatprep.subr.bf16.mxu1 %v8621_v36 }
0x1c6c   : > { %8388 = vmatpush3.bf16.msra.mxu1 %v8327_v19 }
0x1c6d   : > { %8389 = vmatprep.subr.bf16.mxu1 %v8621_v36 }
0x1c70   : > { %8391 = vmatpush3.bf16.msra.mxu1 %v8330_v46 }
0x1c73   : > { %7514 = vmatmul.mubr.f32.vlgmr.msra.gmra.mrb[0].mxu1 %v6702_v45 }
0x1d0e   : > { %v6708_v59 = vpop.f32.mrb[2].mxu0 }
0x1d0f   : > { %v7420_v5 = vpop.f32.mrb[3].mxu0  ;;  %v6709_v54 = vadd.f32 %v7248_v29, %v6708_v59 }
0x1d46   : > { %v7162_v2 = vpop.f32.mrb[0].mxu1 }
0x1d47   : > { %v8474_v4 = vadd.f32 %v7162_v2, %v6709_v54  ;;  %v7515_v12 = vpop.f32.mrb[1].mxu1 }
0x1d49   : > { %7167 = vst.msk [vmem:[%s10016_s7] sm:$0x3] %vm7166_vm0, %v8474_v4 }
0x1d4a PF: > { %s19_s28 = sadd.s32 1, %s8613_s28   ;;  %s10032_s26 = smov %s8609_s27 }
0x1d4b   : > { %p16_p1 = scmp.ge.s32.totalorder %s19_s28, 4   ;;  %s10033_s27 = smov %s10035_s6 }
0x1d4d   :  { %18 = sbr.rel (!%p16_p1) target bundleno = 3 (0x3), region = 93 }

</bundles_post_ra>
